<compile_context>
chip_gen: v5e
topology: v5e:2x2
jax: 0.10.0
libtpu: 0.0.40
codegen_flags: <defaults>
</compile_context>

<pallas_src>
import functools

import jax
import jax.numpy as jnp
from jax import lax
from jax.experimental import pallas as pl
from jax.experimental.pallas import tpu as pltpu


def _cbl_kernel(x_ref, w_ref, bias_ref, o_ref, xf_ref, patch_ref,
                *, H, W, K, pad, n_tile):
    """Fused conv KxK (stride 1, SAME) + folded-BN + LeakyReLU for n_tile images.

    x_ref:     (n_tile, Cp, H*W)          f32 input, NCHW with (H, W) flattened
    w_ref:     (Cout, K*K*Cp)             bf16 weights, BN scale folded, cols = (ky, kx, cin)
    bias_ref:  (Cout, 1)                  f32 folded BN bias
    o_ref:     (n_tile, Cout, H*W)        output block (lane-dense over H*W)
    xf_ref:    (n_tile, Cp, FLAT) bf16    flat halo buffer, FLAT = H*W + 2*pad*(W+1)
    patch_ref: (K*K*Cp, n_tile*H*W) bf16  im2col scratch
    """
    Cp = x_ref.shape[1]
    HW = H * W
    halo = pad * (W + 1)          # leading == trailing halo width in the flat layout

    # ---- flat halo buffer:  [halo zeros | image rows | halo zeros]
    # Halo re-zeroed every step -> each grid iteration is self-contained
    # ("parallel" semantics are genuinely safe on multi-TC parts).
    xf_ref[:, :, :halo] = jnp.zeros((n_tile, Cp, halo), xf_ref.dtype)
    xf_ref[:, :, halo + HW:] = jnp.zeros((n_tile, Cp, halo), xf_ref.dtype)
    xf_ref[:, :, halo:halo + HW] = x_ref[...].astype(xf_ref.dtype)

    # ---- per-kx edge masks (hoisted out of the ky / batch loops).
    # The flat layout wraps rows, so lanes whose image column w would read across
    # the left/right edge must be zeroed (== the SAME-padding value).
    col = lax.broadcasted_iota(jnp.int32, (Cp, HW), 1) % W
    masks = []
    for kx in range(K):
        lo = pad - kx                       # valid image columns: lo <= w < hi
        hi = W + pad - kx
        m = None
        if lo > 0:
            m = col >= lo
        if hi < W:
            m = (col < hi) if m is None else (m & (col < hi))
        masks.append(m)

    # ---- im2col: conv tap (ky, kx) == halo buffer shifted by ky*W + kx.
    # Stores are full-sublane (Cp % 16 == 0) and lane-aligned (offsets % HW == 0).
    for n in range(n_tile):
        for ky in range(K):
            for kx in range(K):
                tap = ky * K + kx
                s = ky * W + kx
                sl = xf_ref[n, :, s:s + HW]          # (Cp, H*W) bf16, lane-offset load
                if masks[kx] is not None:
                    sl = jnp.where(masks[kx], sl, jnp.zeros_like(sl))
                patch_ref[tap * Cp:(tap + 1) * Cp, n * HW:(n + 1) * HW] = sl

    # ---- single MXU matmul: (Cout, K*K*Cp) @ (K*K*Cp, n_tile*H*W) -> f32
    acc = jnp.dot(w_ref[...], patch_ref[...], preferred_element_type=jnp.float32)

    # ---- folded-BN bias + LeakyReLU(0.1) in f32, lane-dense stores
    y = acc + bias_ref[...]
    y = jnp.maximum(y, 0.1 * y)
    for n in range(n_tile):
        o_ref[n] = y[:, n * HW:(n + 1) * HW].astype(o_ref.dtype)


@functools.partial(jax.jit, static_argnames=("kernel_size", "n_tile"))
def cbl_forward(x_nchw, weight, gamma, beta, running_mean, running_var,
                eps=1e-5, kernel_size=3, n_tile=None):
    """x_nchw: (N, Cin, H, W); weight: (Cout, Cin, K, K) — PyTorch conventions."""
    N, Cin, H, W = x_nchw.shape
    Cout = weight.shape[0]
    K = kernel_size
    pad = (K - 1) // 2
    HW = H * W
    flat = HW + 2 * pad * (W + 1)

    # Pad Cin to the bf16 sublane pack (16) so per-tap patch writes are unmasked.
    Cp = ((Cin + 15) // 16) * 16

    # Batch tile: largest divisor of N giving <= 2048 output lanes per step
    # (amortizes per-step overhead; keeps the output block lane-dense).
    if n_tile is None:
        n_tile = 1
        for cand in range(N, 0, -1):
            if N % cand == 0 and cand * HW <= 2048:
                n_tile = cand
                break

    # Free row-major reshape + channel zero-pad only (no spatial pad, no transpose).
    x_flat = x_nchw.reshape(N, Cin, HW)
    if Cp != Cin:
        x_flat = jnp.pad(x_flat, ((0, 0), (0, Cp - Cin), (0, 0)))

    # Fold inference BatchNorm into the conv:  y = (scale * W) (*) x + bias
    scale = gamma / jnp.sqrt(running_var + eps)                        # (Cout,)
    bias = (beta - running_mean * scale).astype(jnp.float32).reshape(Cout, 1)
    w_pad = weight
    if Cp != Cin:
        w_pad = jnp.pad(weight, ((0, 0), (0, Cp - Cin), (0, 0), (0, 0)))
    # tap-major weight matrix: rows = cout, cols ordered (ky, kx, cin)
    w_mat = jnp.transpose(w_pad, (0, 2, 3, 1)).reshape(Cout, K * K * Cp)
    w_mat = (w_mat * scale[:, None]).astype(jnp.bfloat16)

    kernel = functools.partial(_cbl_kernel, H=H, W=W, K=K, pad=pad, n_tile=n_tile)

    out_flat = pl.pallas_call(
        kernel,
        out_shape=jax.ShapeDtypeStruct((N, Cout, HW), x_nchw.dtype),
        grid_spec=pltpu.PrefetchScalarGridSpec(
            num_scalar_prefetch=0,
            grid=(N // n_tile,),
            in_specs=[
                pl.BlockSpec((n_tile, Cp, HW), lambda b: (b, 0, 0)),
                pl.BlockSpec((Cout, K * K * Cp), lambda b: (0, 0)),   # resident in VMEM
                pl.BlockSpec((Cout, 1), lambda b: (0, 0)),            # resident in VMEM
            ],
            out_specs=pl.BlockSpec((n_tile, Cout, HW), lambda b: (b, 0, 0)),
            scratch_shapes=[
                pltpu.VMEM((n_tile, Cp, flat), jnp.bfloat16),         # flat halo buffer
                pltpu.VMEM((K * K * Cp, n_tile * HW), jnp.bfloat16),  # im2col tile
            ],
        ),
        compiler_params=pltpu.CompilerParams(
            dimension_semantics=("parallel",)),
    )(x_flat, w_mat, bias)

    # Free reshape back to NCHW.
    return out_flat.reshape(N, Cout, H, W)


def _reference(x, weight, gamma, beta, mean, var, eps=1e-5):
    y = lax.conv_general_dilated(
        x, weight, window_strides=(1, 1), padding="SAME",
        dimension_numbers=("NCHW", "OIHW", "NCHW"),
        precision=lax.Precision.HIGHEST)
    scale = (gamma / jnp.sqrt(var + eps)).reshape(1, -1, 1, 1)
    bias = (beta - mean * gamma / jnp.sqrt(var + eps)).reshape(1, -1, 1, 1)
    y = y * scale + bias
    return jnp.where(y > 0, y, 0.1 * y)


if __name__ == "__main__":
    key = jax.random.PRNGKey(0)
    k_x, k_w, k_g, k_b, k_m, k_v = jax.random.split(key, 6)

    N, Cin, Cout, H, W, K = 2, 4, 8, 16, 16, 3

    x = jax.random.normal(k_x, (N, Cin, H, W), jnp.float32)
    weight = jax.random.normal(k_w, (Cout, Cin, K, K), jnp.float32) * 0.1
    gamma = jax.random.normal(k_g, (Cout,), jnp.float32) * 0.1 + 1.0
    beta = jax.random.normal(k_b, (Cout,), jnp.float32) * 0.1
    running_mean = jax.random.normal(k_m, (Cout,), jnp.float32) * 0.1
    running_var = jnp.abs(jax.random.normal(k_v, (Cout,), jnp.float32)) * 0.1 + 1.0

    out = cbl_forward(x, weight, gamma, beta, running_mean, running_var)
    out = jax.block_until_ready(out)

    ref = _reference(x, weight, gamma, beta, running_mean, running_var)
    assert out.shape == (N, Cout, H, W)
    # bf16 MXU operands -> looser tolerance than a pure-f32 conv.
    assert jnp.allclose(out, ref, rtol=3e-2, atol=3e-2), "mismatch vs reference"

    print("KERNEL_OK")
</pallas_src>

<mosaic_0001>
module attributes {stable_mosaic.version = 11 : i64} {
  func.func @_cbl_kernel(%arg0: i32, %arg1: memref<2x16x256xf32, #tpu.memory_space<vmem>>, %arg2: memref<8x144xbf16, #tpu.memory_space<vmem>>, %arg3: memref<8x1xf32, #tpu.memory_space<vmem>>, %arg4: memref<2x8x256xf32, #tpu.memory_space<vmem>>, %arg5: memref<2x16x290xbf16, #tpu.memory_space<vmem>>, %arg6: memref<144x512xbf16, #tpu.memory_space<vmem>>) attributes {dimension_semantics = [#tpu.dimension_semantics<parallel>], iteration_bounds = array<i64: 1>, scalar_prefetch = 0 : i64, scratch_operands = 2 : i64, tpu.core_type = #tpu.core_type<tc>, window_params = [{transform_indices = @transform_0, window_bounds = array<i64: 2, 16, 256>}, {pipeline_mode = #tpu.pipeline_mode<synchronous>, transform_indices = @transform_1, window_bounds = array<i64: 8, 144>}, {pipeline_mode = #tpu.pipeline_mode<synchronous>, transform_indices = @transform_2, window_bounds = array<i64: 8, 1>}, {transform_indices = @transform_3, window_bounds = array<i64: 2, 8, 256>}]} {
    %cst = arith.constant 0.000000e+00 : bf16
    %0 = vector.broadcast %cst : bf16 to vector<2x16x17xbf16>
    %c0 = arith.constant 0 : index
    %c0_0 = arith.constant 0 : index
    %c0_1 = arith.constant 0 : index
    %1 = vector.load %arg5[%c0, %c0_0, %c0_1] : memref<2x16x290xbf16, #tpu.memory_space<vmem>>, vector<2x16x17xbf16>
    tpu.vector_store %arg5[%c0, %c0_0, %c0_1], %0 {strides = array<i32>} : memref<2x16x290xbf16, #tpu.memory_space<vmem>>, vector<2x16x17xbf16>,
    %cst_2 = arith.constant 0.000000e+00 : bf16
    %2 = vector.broadcast %cst_2 : bf16 to vector<2x16x17xbf16>
    %c0_3 = arith.constant 0 : index
    %c0_4 = arith.constant 0 : index
    %c273 = arith.constant 273 : index
    %3 = vector.load %arg5[%c0_3, %c0_4, %c273] : memref<2x16x290xbf16, #tpu.memory_space<vmem>>, vector<2x16x17xbf16>
    tpu.vector_store %arg5[%c0_3, %c0_4, %c273], %2 {strides = array<i32>} : memref<2x16x290xbf16, #tpu.memory_space<vmem>>, vector<2x16x17xbf16>,
    %c0_5 = arith.constant 0 : index
    %c0_6 = arith.constant 0 : index
    %c0_7 = arith.constant 0 : index
    %4 = vector.load %arg1[%c0_5, %c0_6, %c0_7] : memref<2x16x256xf32, #tpu.memory_space<vmem>>, vector<2x16x256xf32>
    %5 = arith.truncf %4 : vector<2x16x256xf32> to vector<2x16x256xbf16>
    %c0_8 = arith.constant 0 : index
    %c0_9 = arith.constant 0 : index
    %c17 = arith.constant 17 : index
    %6 = vector.load %arg5[%c0_8, %c0_9, %c17] : memref<2x16x290xbf16, #tpu.memory_space<vmem>>, vector<2x16x256xbf16>
    tpu.vector_store %arg5[%c0_8, %c0_9, %c17], %5 {strides = array<i32>} : memref<2x16x290xbf16, #tpu.memory_space<vmem>>, vector<2x16x256xbf16>,
    %7 = tpu.iota {dimensions = array<i32: 1>} : vector<16x256xi32>
    %c16_i32 = arith.constant 16 : i32
    %c0_i32 = arith.constant 0 : i32
    %8 = arith.cmpi eq, %c16_i32, %c0_i32 : i32
    %c1_i32 = arith.constant 1 : i32
    %9 = arith.select %8, %c1_i32, %c16_i32 : i32
    %10 = vector.broadcast %9 : i32 to vector<16x256xi32>
    %11 = arith.remsi %7, %10 : vector<16x256xi32>
    %c0_i32_10 = arith.constant 0 : i32
    %12 = vector.broadcast %c0_i32_10 : i32 to vector<16x256xi32>
    %13 = arith.cmpi ne, %11, %12 : vector<16x256xi32>
    %c0_i32_11 = arith.constant 0 : i32
    %14 = vector.broadcast %c0_i32_11 : i32 to vector<16x256xi32>
    %15 = arith.cmpi slt, %11, %14 : vector<16x256xi32>
    %c0_i32_12 = arith.constant 0 : i32
    %16 = arith.cmpi slt, %9, %c0_i32_12 : i32
    %17 = vector.broadcast %16 : i1 to vector<16x256xi1>
    %18 = vector.broadcast %17 : vector<16x256xi1> to vector<16x256xi1>
    %19 = arith.xori %15, %18 : vector<16x256xi1>
    %20 = arith.andi %19, %13 : vector<16x256xi1>
    %21 = vector.broadcast %9 : i32 to vector<16x256xi32>
    %22 = arith.addi %11, %21 : vector<16x256xi32>
    %23 = arith.select %20, %22, %11 : vector<16x256xi1>, vector<16x256xi32>
    %c1_i32_13 = arith.constant 1 : i32
    %24 = vector.broadcast %c1_i32_13 : i32 to vector<16x256xi32>
    %25 = arith.cmpi sge, %23, %24 : vector<16x256xi32>
    %c15_i32 = arith.constant 15 : i32
    %26 = vector.broadcast %c15_i32 : i32 to vector<16x256xi32>
    %27 = arith.cmpi slt, %23, %26 : vector<16x256xi32>
    %c0_14 = arith.constant 0 : index
    %c0_15 = arith.constant 0 : index
    %c0_16 = arith.constant 0 : index
    %28 = vector.load %arg5[%c0_14, %c0_15, %c0_16] : memref<2x16x290xbf16, #tpu.memory_space<vmem>>, vector<1x16x256xbf16>
    %29 = vector.shape_cast %28 : vector<1x16x256xbf16> to vector<16x256xbf16>
    %cst_17 = arith.constant 0.000000e+00 : bf16
    %30 = vector.broadcast %cst_17 : bf16 to vector<16x256xbf16>
    %31 = arith.select %25, %29, %30 : vector<16x256xi1>, vector<16x256xbf16>
    %c0_18 = arith.constant 0 : index
    %c0_19 = arith.constant 0 : index
    %32 = vector.load %arg6[%c0_18, %c0_19] : memref<144x512xbf16, #tpu.memory_space<vmem>>, vector<16x256xbf16>
    tpu.vector_store %arg6[%c0_18, %c0_19], %31 {strides = array<i32>} : memref<144x512xbf16, #tpu.memory_space<vmem>>, vector<16x256xbf16>,
    %c0_20 = arith.constant 0 : index
    %c0_21 = arith.constant 0 : index
    %c1 = arith.constant 1 : index
    %33 = vector.load %arg5[%c0_20, %c0_21, %c1] : memref<2x16x290xbf16, #tpu.memory_space<vmem>>, vector<1x16x256xbf16>
    %34 = vector.shape_cast %33 : vector<1x16x256xbf16> to vector<16x256xbf16>
    %c16 = arith.constant 16 : index
    %c0_22 = arith.constant 0 : index
    %35 = vector.load %arg6[%c16, %c0_22] : memref<144x512xbf16, #tpu.memory_space<vmem>>, vector<16x256xbf16>
    tpu.vector_store %arg6[%c16, %c0_22], %34 {strides = array<i32>} : memref<144x512xbf16, #tpu.memory_space<vmem>>, vector<16x256xbf16>,
    %c0_23 = arith.constant 0 : index
    %c0_24 = arith.constant 0 : index
    %c2 = arith.constant 2 : index
    %36 = vector.load %arg5[%c0_23, %c0_24, %c2] : memref<2x16x290xbf16, #tpu.memory_space<vmem>>, vector<1x16x256xbf16>
    %37 = vector.shape_cast %36 : vector<1x16x256xbf16> to vector<16x256xbf16>
    %cst_25 = arith.constant 0.000000e+00 : bf16
    %38 = vector.broadcast %cst_25 : bf16 to vector<16x256xbf16>
    %39 = arith.select %27, %37, %38 : vector<16x256xi1>, vector<16x256xbf16>
    %c32 = arith.constant 32 : index
    %c0_26 = arith.constant 0 : index
    %40 = vector.load %arg6[%c32, %c0_26] : memref<144x512xbf16, #tpu.memory_space<vmem>>, vector<16x256xbf16>
    tpu.vector_store %arg6[%c32, %c0_26], %39 {strides = array<i32>} : memref<144x512xbf16, #tpu.memory_space<vmem>>, vector<16x256xbf16>,
    %c0_27 = arith.constant 0 : index
    %c0_28 = arith.constant 0 : index
    %c16_29 = arith.constant 16 : index
    %41 = vector.load %arg5[%c0_27, %c0_28, %c16_29] : memref<2x16x290xbf16, #tpu.memory_space<vmem>>, vector<1x16x256xbf16>
    %42 = vector.shape_cast %41 : vector<1x16x256xbf16> to vector<16x256xbf16>
    %cst_30 = arith.constant 0.000000e+00 : bf16
    %43 = vector.broadcast %cst_30 : bf16 to vector<16x256xbf16>
    %44 = arith.select %25, %42, %43 : vector<16x256xi1>, vector<16x256xbf16>
    %c48 = arith.constant 48 : index
    %c0_31 = arith.constant 0 : index
    %45 = vector.load %arg6[%c48, %c0_31] : memref<144x512xbf16, #tpu.memory_space<vmem>>, vector<16x256xbf16>
    tpu.vector_store %arg6[%c48, %c0_31], %44 {strides = array<i32>} : memref<144x512xbf16, #tpu.memory_space<vmem>>, vector<16x256xbf16>,
    %c0_32 = arith.constant 0 : index
    %c0_33 = arith.constant 0 : index
    %c17_34 = arith.constant 17 : index
    %46 = vector.load %arg5[%c0_32, %c0_33, %c17_34] : memref<2x16x290xbf16, #tpu.memory_space<vmem>>, vector<1x16x256xbf16>
    %47 = vector.shape_cast %46 : vector<1x16x256xbf16> to vector<16x256xbf16>
    %c64 = arith.constant 64 : index
    %c0_35 = arith.constant 0 : index
    %48 = vector.load %arg6[%c64, %c0_35] : memref<144x512xbf16, #tpu.memory_space<vmem>>, vector<16x256xbf16>
    tpu.vector_store %arg6[%c64, %c0_35], %47 {strides = array<i32>} : memref<144x512xbf16, #tpu.memory_space<vmem>>, vector<16x256xbf16>,
    %c0_36 = arith.constant 0 : index
    %c0_37 = arith.constant 0 : index
    %c18 = arith.constant 18 : index
    %49 = vector.load %arg5[%c0_36, %c0_37, %c18] : memref<2x16x290xbf16, #tpu.memory_space<vmem>>, vector<1x16x256xbf16>
    %50 = vector.shape_cast %49 : vector<1x16x256xbf16> to vector<16x256xbf16>
    %cst_38 = arith.constant 0.000000e+00 : bf16
    %51 = vector.broadcast %cst_38 : bf16 to vector<16x256xbf16>
    %52 = arith.select %27, %50, %51 : vector<16x256xi1>, vector<16x256xbf16>
    %c80 = arith.constant 80 : index
    %c0_39 = arith.constant 0 : index
    %53 = vector.load %arg6[%c80, %c0_39] : memref<144x512xbf16, #tpu.memory_space<vmem>>, vector<16x256xbf16>
    tpu.vector_store %arg6[%c80, %c0_39], %52 {strides = array<i32>} : memref<144x512xbf16, #tpu.memory_space<vmem>>, vector<16x256xbf16>,
    %c0_40 = arith.constant 0 : index
    %c0_41 = arith.constant 0 : index
    %c32_42 = arith.constant 32 : index
    %54 = vector.load %arg5[%c0_40, %c0_41, %c32_42] : memref<2x16x290xbf16, #tpu.memory_space<vmem>>, vector<1x16x256xbf16>
    %55 = vector.shape_cast %54 : vector<1x16x256xbf16> to vector<16x256xbf16>
    %cst_43 = arith.constant 0.000000e+00 : bf16
    %56 = vector.broadcast %cst_43 : bf16 to vector<16x256xbf16>
    %57 = arith.select %25, %55, %56 : vector<16x256xi1>, vector<16x256xbf16>
    %c96 = arith.constant 96 : index
    %c0_44 = arith.constant 0 : index
    %58 = vector.load %arg6[%c96, %c0_44] : memref<144x512xbf16, #tpu.memory_space<vmem>>, vector<16x256xbf16>
    tpu.vector_store %arg6[%c96, %c0_44], %57 {strides = array<i32>} : memref<144x512xbf16, #tpu.memory_space<vmem>>, vector<16x256xbf16>,
    %c0_45 = arith.constant 0 : index
    %c0_46 = arith.constant 0 : index
    %c33 = arith.constant 33 : index
    %59 = vector.load %arg5[%c0_45, %c0_46, %c33] : memref<2x16x290xbf16, #tpu.memory_space<vmem>>, vector<1x16x256xbf16>
    %60 = vector.shape_cast %59 : vector<1x16x256xbf16> to vector<16x256xbf16>
    %c112 = arith.constant 112 : index
    %c0_47 = arith.constant 0 : index
    %61 = vector.load %arg6[%c112, %c0_47] : memref<144x512xbf16, #tpu.memory_space<vmem>>, vector<16x256xbf16>
    tpu.vector_store %arg6[%c112, %c0_47], %60 {strides = array<i32>} : memref<144x512xbf16, #tpu.memory_space<vmem>>, vector<16x256xbf16>,
    %c0_48 = arith.constant 0 : index
    %c0_49 = arith.constant 0 : index
    %c34 = arith.constant 34 : index
    %62 = vector.load %arg5[%c0_48, %c0_49, %c34] : memref<2x16x290xbf16, #tpu.memory_space<vmem>>, vector<1x16x256xbf16>
    %63 = vector.shape_cast %62 : vector<1x16x256xbf16> to vector<16x256xbf16>
    %cst_50 = arith.constant 0.000000e+00 : bf16
    %64 = vector.broadcast %cst_50 : bf16 to vector<16x256xbf16>
    %65 = arith.select %27, %63, %64 : vector<16x256xi1>, vector<16x256xbf16>
    %c128 = arith.constant 128 : index
    %c0_51 = arith.constant 0 : index
    %66 = vector.load %arg6[%c128, %c0_51] : memref<144x512xbf16, #tpu.memory_space<vmem>>, vector<16x256xbf16>
    tpu.vector_store %arg6[%c128, %c0_51], %65 {strides = array<i32>} : memref<144x512xbf16, #tpu.memory_space<vmem>>, vector<16x256xbf16>,
    %c1_52 = arith.constant 1 : index
    %c0_53 = arith.constant 0 : index
    %c0_54 = arith.constant 0 : index
    %67 = vector.load %arg5[%c1_52, %c0_53, %c0_54] : memref<2x16x290xbf16, #tpu.memory_space<vmem>>, vector<1x16x256xbf16>
    %68 = vector.shape_cast %67 : vector<1x16x256xbf16> to vector<16x256xbf16>
    %cst_55 = arith.constant 0.000000e+00 : bf16
    %69 = vector.broadcast %cst_55 : bf16 to vector<16x256xbf16>
    %70 = arith.select %25, %68, %69 : vector<16x256xi1>, vector<16x256xbf16>
    %c0_56 = arith.constant 0 : index
    %c256 = arith.constant 256 : index
    %71 = vector.load %arg6[%c0_56, %c256] : memref<144x512xbf16, #tpu.memory_space<vmem>>, vector<16x256xbf16>
    tpu.vector_store %arg6[%c0_56, %c256], %70 {strides = array<i32>} : memref<144x512xbf16, #tpu.memory_space<vmem>>, vector<16x256xbf16>,
    %c1_57 = arith.constant 1 : index
    %c0_58 = arith.constant 0 : index
    %c1_59 = arith.constant 1 : index
    %72 = vector.load %arg5[%c1_57, %c0_58, %c1_59] : memref<2x16x290xbf16, #tpu.memory_space<vmem>>, vector<1x16x256xbf16>
    %73 = vector.shape_cast %72 : vector<1x16x256xbf16> to vector<16x256xbf16>
    %c16_60 = arith.constant 16 : index
    %c256_61 = arith.constant 256 : index
    %74 = vector.load %arg6[%c16_60, %c256_61] : memref<144x512xbf16, #tpu.memory_space<vmem>>, vector<16x256xbf16>
    tpu.vector_store %arg6[%c16_60, %c256_61], %73 {strides = array<i32>} : memref<144x512xbf16, #tpu.memory_space<vmem>>, vector<16x256xbf16>,
    %c1_62 = arith.constant 1 : index
    %c0_63 = arith.constant 0 : index
    %c2_64 = arith.constant 2 : index
    %75 = vector.load %arg5[%c1_62, %c0_63, %c2_64] : memref<2x16x290xbf16, #tpu.memory_space<vmem>>, vector<1x16x256xbf16>
    %76 = vector.shape_cast %75 : vector<1x16x256xbf16> to vector<16x256xbf16>
    %cst_65 = arith.constant 0.000000e+00 : bf16
    %77 = vector.broadcast %cst_65 : bf16 to vector<16x256xbf16>
    %78 = arith.select %27, %76, %77 : vector<16x256xi1>, vector<16x256xbf16>
    %c32_66 = arith.constant 32 : index
    %c256_67 = arith.constant 256 : index
    %79 = vector.load %arg6[%c32_66, %c256_67] : memref<144x512xbf16, #tpu.memory_space<vmem>>, vector<16x256xbf16>
    tpu.vector_store %arg6[%c32_66, %c256_67], %78 {strides = array<i32>} : memref<144x512xbf16, #tpu.memory_space<vmem>>, vector<16x256xbf16>,
    %c1_68 = arith.constant 1 : index
    %c0_69 = arith.constant 0 : index
    %c16_70 = arith.constant 16 : index
    %80 = vector.load %arg5[%c1_68, %c0_69, %c16_70] : memref<2x16x290xbf16, #tpu.memory_space<vmem>>, vector<1x16x256xbf16>
    %81 = vector.shape_cast %80 : vector<1x16x256xbf16> to vector<16x256xbf16>
    %cst_71 = arith.constant 0.000000e+00 : bf16
    %82 = vector.broadcast %cst_71 : bf16 to vector<16x256xbf16>
    %83 = arith.select %25, %81, %82 : vector<16x256xi1>, vector<16x256xbf16>
    %c48_72 = arith.constant 48 : index
    %c256_73 = arith.constant 256 : index
    %84 = vector.load %arg6[%c48_72, %c256_73] : memref<144x512xbf16, #tpu.memory_space<vmem>>, vector<16x256xbf16>
    tpu.vector_store %arg6[%c48_72, %c256_73], %83 {strides = array<i32>} : memref<144x512xbf16, #tpu.memory_space<vmem>>, vector<16x256xbf16>,
    %c1_74 = arith.constant 1 : index
    %c0_75 = arith.constant 0 : index
    %c17_76 = arith.constant 17 : index
    %85 = vector.load %arg5[%c1_74, %c0_75, %c17_76] : memref<2x16x290xbf16, #tpu.memory_space<vmem>>, vector<1x16x256xbf16>
    %86 = vector.shape_cast %85 : vector<1x16x256xbf16> to vector<16x256xbf16>
    %c64_77 = arith.constant 64 : index
    %c256_78 = arith.constant 256 : index
    %87 = vector.load %arg6[%c64_77, %c256_78] : memref<144x512xbf16, #tpu.memory_space<vmem>>, vector<16x256xbf16>
    tpu.vector_store %arg6[%c64_77, %c256_78], %86 {strides = array<i32>} : memref<144x512xbf16, #tpu.memory_space<vmem>>, vector<16x256xbf16>,
    %c1_79 = arith.constant 1 : index
    %c0_80 = arith.constant 0 : index
    %c18_81 = arith.constant 18 : index
    %88 = vector.load %arg5[%c1_79, %c0_80, %c18_81] : memref<2x16x290xbf16, #tpu.memory_space<vmem>>, vector<1x16x256xbf16>
    %89 = vector.shape_cast %88 : vector<1x16x256xbf16> to vector<16x256xbf16>
    %cst_82 = arith.constant 0.000000e+00 : bf16
    %90 = vector.broadcast %cst_82 : bf16 to vector<16x256xbf16>
    %91 = arith.select %27, %89, %90 : vector<16x256xi1>, vector<16x256xbf16>
    %c80_83 = arith.constant 80 : index
    %c256_84 = arith.constant 256 : index
    %92 = vector.load %arg6[%c80_83, %c256_84] : memref<144x512xbf16, #tpu.memory_space<vmem>>, vector<16x256xbf16>
    tpu.vector_store %arg6[%c80_83, %c256_84], %91 {strides = array<i32>} : memref<144x512xbf16, #tpu.memory_space<vmem>>, vector<16x256xbf16>,
    %c1_85 = arith.constant 1 : index
    %c0_86 = arith.constant 0 : index
    %c32_87 = arith.constant 32 : index
    %93 = vector.load %arg5[%c1_85, %c0_86, %c32_87] : memref<2x16x290xbf16, #tpu.memory_space<vmem>>, vector<1x16x256xbf16>
    %94 = vector.shape_cast %93 : vector<1x16x256xbf16> to vector<16x256xbf16>
    %cst_88 = arith.constant 0.000000e+00 : bf16
    %95 = vector.broadcast %cst_88 : bf16 to vector<16x256xbf16>
    %96 = arith.select %25, %94, %95 : vector<16x256xi1>, vector<16x256xbf16>
    %c96_89 = arith.constant 96 : index
    %c256_90 = arith.constant 256 : index
    %97 = vector.load %arg6[%c96_89, %c256_90] : memref<144x512xbf16, #tpu.memory_space<vmem>>, vector<16x256xbf16>
    tpu.vector_store %arg6[%c96_89, %c256_90], %96 {strides = array<i32>} : memref<144x512xbf16, #tpu.memory_space<vmem>>, vector<16x256xbf16>,
    %c1_91 = arith.constant 1 : index
    %c0_92 = arith.constant 0 : index
    %c33_93 = arith.constant 33 : index
    %98 = vector.load %arg5[%c1_91, %c0_92, %c33_93] : memref<2x16x290xbf16, #tpu.memory_space<vmem>>, vector<1x16x256xbf16>
    %99 = vector.shape_cast %98 : vector<1x16x256xbf16> to vector<16x256xbf16>
    %c112_94 = arith.constant 112 : index
    %c256_95 = arith.constant 256 : index
    %100 = vector.load %arg6[%c112_94, %c256_95] : memref<144x512xbf16, #tpu.memory_space<vmem>>, vector<16x256xbf16>
    tpu.vector_store %arg6[%c112_94, %c256_95], %99 {strides = array<i32>} : memref<144x512xbf16, #tpu.memory_space<vmem>>, vector<16x256xbf16>,
    %c1_96 = arith.constant 1 : index
    %c0_97 = arith.constant 0 : index
    %c34_98 = arith.constant 34 : index
    %101 = vector.load %arg5[%c1_96, %c0_97, %c34_98] : memref<2x16x290xbf16, #tpu.memory_space<vmem>>, vector<1x16x256xbf16>
    %102 = vector.shape_cast %101 : vector<1x16x256xbf16> to vector<16x256xbf16>
    %cst_99 = arith.constant 0.000000e+00 : bf16
    %103 = vector.broadcast %cst_99 : bf16 to vector<16x256xbf16>
    %104 = arith.select %27, %102, %103 : vector<16x256xi1>, vector<16x256xbf16>
    %c128_100 = arith.constant 128 : index
    %c256_101 = arith.constant 256 : index
    %105 = vector.load %arg6[%c128_100, %c256_101] : memref<144x512xbf16, #tpu.memory_space<vmem>>, vector<16x256xbf16>
    tpu.vector_store %arg6[%c128_100, %c256_101], %104 {strides = array<i32>} : memref<144x512xbf16, #tpu.memory_space<vmem>>, vector<16x256xbf16>,
    %c0_102 = arith.constant 0 : index
    %c0_103 = arith.constant 0 : index
    %106 = vector.load %arg2[%c0_102, %c0_103] : memref<8x144xbf16, #tpu.memory_space<vmem>>, vector<8x144xbf16>
    %c0_104 = arith.constant 0 : index
    %c0_105 = arith.constant 0 : index
    %107 = vector.load %arg6[%c0_104, %c0_105] : memref<144x512xbf16, #tpu.memory_space<vmem>>, vector<144x512xbf16>
    %cst_106 = arith.constant dense<0.000000e+00> : vector<8x512xf32>
    %108 = tpu.matmul %106, %107, %cst_106 {dimension_numbers = #tpu.dot_dimension_numbers<[1], [0], [0], [1], [0, 0, 1, 1], [], []>} : vector<8x144xbf16>, vector<144x512xbf16>, vector<8x512xf32> -> vector<8x512xf32>
    %c0_107 = arith.constant 0 : index
    %c0_108 = arith.constant 0 : index
    %109 = vector.load %arg3[%c0_107, %c0_108] : memref<8x1xf32, #tpu.memory_space<vmem>>, vector<8x1xf32>
    %110 = vector.broadcast %109 : vector<8x1xf32> to vector<8x512xf32>
    %111 = arith.addf %108, %110 : vector<8x512xf32>
    %cst_109 = arith.constant 1.000000e-01 : f32
    %112 = vector.broadcast %cst_109 : f32 to vector<8x512xf32>
    %113 = arith.mulf %112, %111 : vector<8x512xf32>
    %114 = arith.maximumf %111, %113 : vector<8x512xf32>
    %115 = vector.extract_strided_slice %114 {offsets = [0, 0], sizes = [8, 256], strides = [1, 1]} : vector<8x512xf32> to vector<8x256xf32>
    %c0_110 = arith.constant 0 : index
    %c0_111 = arith.constant 0 : index
    %c0_112 = arith.constant 0 : index
    %116 = vector.load %arg4[%c0_110, %c0_111, %c0_112] : memref<2x8x256xf32, #tpu.memory_space<vmem>>, vector<1x8x256xf32>
    %117 = vector.shape_cast %116 : vector<1x8x256xf32> to vector<8x256xf32>
    %118 = vector.shape_cast %115 : vector<8x256xf32> to vector<1x8x256xf32>
    tpu.vector_store %arg4[%c0_110, %c0_111, %c0_112], %118 {strides = array<i32>} : memref<2x8x256xf32, #tpu.memory_space<vmem>>, vector<1x8x256xf32>,
    %119 = vector.extract_strided_slice %114 {offsets = [0, 256], sizes = [8, 256], strides = [1, 1]} : vector<8x512xf32> to vector<8x256xf32>
    %c1_113 = arith.constant 1 : index
    %c0_114 = arith.constant 0 : index
    %c0_115 = arith.constant 0 : index
    %120 = vector.load %arg4[%c1_113, %c0_114, %c0_115] : memref<2x8x256xf32, #tpu.memory_space<vmem>>, vector<1x8x256xf32>
    %121 = vector.shape_cast %120 : vector<1x8x256xf32> to vector<8x256xf32>
    %122 = vector.shape_cast %119 : vector<8x256xf32> to vector<1x8x256xf32>
    tpu.vector_store %arg4[%c1_113, %c0_114, %c0_115], %122 {strides = array<i32>} : memref<2x8x256xf32, #tpu.memory_space<vmem>>, vector<1x8x256xf32>,
    return
  }
  func.func @transform_0(%arg0: i32) -> (i32, i32, i32) {
    %c0_i32 = arith.constant 0 : i32
    %c0_i32_0 = arith.constant 0 : i32
    %c0_i32_1 = arith.constant 0 : i32
    return %arg0, %c0_i32, %c0_i32_0 : i32, i32, i32
  }
  func.func @transform_1(%arg0: i32) -> (i32, i32) {
    %c0_i32 = arith.constant 0 : i32
    %c0_i32_0 = arith.constant 0 : i32
    %c0_i32_1 = arith.constant 0 : i32
    return %c0_i32, %c0_i32_0 : i32, i32
  }
  func.func @transform_2(%arg0: i32) -> (i32, i32) {
    %c0_i32 = arith.constant 0 : i32
    %c0_i32_0 = arith.constant 0 : i32
    %c0_i32_1 = arith.constant 0 : i32
    return %c0_i32, %c0_i32_0 : i32, i32
  }
  func.func @transform_3(%arg0: i32) -> (i32, i32, i32) {
    %c0_i32 = arith.constant 0 : i32
    %c0_i32_0 = arith.constant 0 : i32
    %c0_i32_1 = arith.constant 0 : i32
    return %arg0, %c0_i32, %c0_i32_0 : i32, i32, i32
  }
}

</mosaic_0001>

<bundles_post_ra>
// kernel: cbl_forward.1
= control target key start
LH: loop header
LB: loop body
LE: loop exit
PB: predicated region body
PF: predicated region fallthrough
CT: control target
= control target key end

     0   :  { %v79_v0 = vlaneseq  ;;  %vm22_vm0 = vcmask 273544   ;;  %v1276_v3 = vmov 0   ;;  %vm17_vm1 = vcmask 134144   ;;  %s1277_s20 = smov 17   ;;  %s1279_s29 = smov 18   ;;  %s1832_s0 = inlined_call_operand.vmem [shape: f32[2,16,256], index: 0, kind: input, shape index: {}]   ;;  %s1833_s1 = inlined_call_operand.vmem [shape: bf16[8,144], index: 1, kind: input, shape index: {}]   ;;  %s1834_s2 = inlined_call_operand.vmem [shape: f32[8,1], index: 2, kind: input, shape index: {}]   ;;  %s1835_s3 = inlined_call_operand.vmem [shape: f32[2,8,256], index: 3, kind: output, shape index: {}]  }
   0x1   :  { %v27_v1 = vld [vmem:[%s1832_s0] sm:$0xff]  ;;  %v28_v2 = vld [vmem:[%s1832_s0 + $0x8] sm:$0xff]  ;;  %1274 = vset.pattern.permute.xlu1 %v1276_v3  ;;  %1275 = vset.pattern.permute.xlu0 %v1276_v3  ;;  %20 = vst.msk [vmem:[#allocation2 + $0x18] sm:$0xf] %vm17_vm1, %v1276_v3  ;;  %v29_v11 = vld [vmem:[%s1832_s0 + $0x10] sm:$0xff]  ;;  %s1280_s30 = smov 16   ;;  %v1375_v31 = vunpack.c.l.b16 %v1276_v3  ;;  %v1378_v32 = vunpack.c.h.b16 %v1276_v3 }
   0x2   :  { %v35_v4 = vpack.c.bf16 %v28_v2, %v27_v1  ;;  %v80_v5 = vand.u32 127, %v79_v0  ;;  %v31_v6 = vld [vmem:[%s1832_s0 + $0x20] sm:$0xff]  ;;  %v32_v7 = vld [vmem:[%s1832_s0 + $0x28] sm:$0xff]  ;;  %25 = vst.msk [vmem:[#allocation2 + $0x20] sm:$0xf] %vm22_vm0, %v1276_v3  ;;  %v30_v12 = vld [vmem:[%s1832_s0 + $0x18] sm:$0xff] }
   0x3   :  { %v37_v8 = vpack.c.bf16 %v32_v7, %v31_v6  ;;  %18 = vst.msk [vmem:[#allocation2] sm:$0xf] %vm17_vm1, %v1276_v3  ;;  %v33_v14 = vld [vmem:[%s1832_s0 + $0x30] sm:$0xff]  ;;  %v34_v15 = vld [vmem:[%s1832_s0 + $0x38] sm:$0xff]  ;;  %v36_v16 = vpack.c.bf16 %v30_v12, %v29_v11  ;;  %s1278_s0 = smov 32   ;;  %s1281_s4 = smov 34  }
   0x4   :  { %43 = vrot.lane.b32.xlu0 %v35_v4, %s1277_s20  ;;  %v81_v9 = vadd.s32 128, %v80_v5  ;;  %v86_v10 = vand.u32 15, %v80_v5  ;;  %19 = vst.msk [vmem:[#allocation2 + $0xc] sm:$0xf] %vm17_vm1, %v1276_v3  ;;  %v38_v18 = vpack.c.bf16 %v34_v15, %v33_v14  ;;  %s1282_s5 = smov 2   ;;  %vm68_vm8 = vcmask 1043592  }
   0x5   :  { %47 = vrot.lane.b32.xlu2 %v37_v8, %s1277_s20  ;;  %21 = vst.msk [vmem:[#allocation2 + $0x24] sm:$0xf] %vm17_vm1, %v1276_v3  ;;  %vm69_vm9 = vcmask 1047556   ;;  %vm55_vm10 = vcmask 138240   ;;  %s1283_s6 = smov 95   ;;  %vm423_vm12 = vcmask 277504  }
   0x6   :  { %v93_v13 = vand.u32 15, %v81_v9  ;;  %vm106_vm2 = vcmp.ge.s32.totalorder %v86_v10, 1  ;;  %23 = vst.msk [vmem:[#allocation2 + $0x8] sm:$0xf] %vm22_vm0, %v1276_v3  ;;  %vm108_vm5 = vcmp.lt.s32.totalorder %v86_v10, 15  ;;  %vm1361_vm11 = vmor %vm69_vm9, %vm68_vm8  ;;  %s1284_s7 = smov 111  }
   0x7   :  { %24 = vst.msk [vmem:[#allocation2 + $0x14] sm:$0xf] %vm22_vm0, %v1276_v3  ;;  %s1285_s8 = smov 127   ;;  %s1286_s9 = smov 96  }
   0x8   :  { %vm107_vm3 = vcmp.ge.s32.totalorder %v93_v13, 1  ;;  %vm109_vm6 = vcmp.lt.s32.totalorder %v93_v13, 15  ;;  %26 = vst.msk [vmem:[#allocation2 + $0x2c] sm:$0xf] %vm22_vm0, %v1276_v3  ;;  %s1287_s10 = smov 110   ;;  %s1288_s11 = smov 112  }
   0x9   :  { %vm1349_vm4 = vmpackc.low %vm107_vm3, %vm106_vm2  ;;  %s1289_s12 = smov 126   ;;  %s1290_s13 = smov 94  }
   0xa   :  { %v205_v19 = vsel %vm1349_vm4, 65537, %v1276_v3  ;;  %vm151_vm7 = vmpackc.low %vm109_vm6, %vm108_vm5 }
   0xb   :  { %339 = vrot.lane.b32.xlu1 %v205_v19, %s1278_s0  ;;  %v152_v20 = vsel %vm151_vm7, 65537, %v1276_v3 }
   0xc   :  { %45 = vrot.lane.b32.xlu0 %v36_v16, %s1277_s20 }
   0xd   :  { %49 = vrot.lane.b32.xlu2 %v38_v18, %s1277_s20 }
  0x13   :  { %287 = vrot.lane.b32.xlu1 %v152_v20, %s1279_s29 }
  0x14   :  { %206 = vrot.lane.b32.xlu0 %v205_v19, %s1280_s30 }
  0x15   :  { %420 = vrot.lane.b32.xlu2 %v152_v20, %s1281_s4 }
  0x1b   :  { %153 = vrot.lane.b32.xlu1 %v152_v20, %s1282_s5 }
  0x5f   :  { %v48_v21 = vpop.permute.xlu2 %47 }
  0x60   :  { %v53_v22 = vrot.slane %v48_v21, 4 }
  0x62   :  { %v58_v24 = vsel %vm55_vm10, %v53_v22, %v48_v21  ;;  %76 = vst.msk [vmem:[#allocation2 + $0x20] sm:$0xf] %vm17_vm1, %v53_v22 }
  0x63   :  { %75 = vst.msk [vmem:[#allocation2 + $0x18] sm:$0xff] %vm1361_vm11, %v58_v24 }
  0x67   :  { %v50_v25 = vpop.permute.xlu2 %49 }
  0x68   :  { %v54_v26 = vrot.slane %v50_v25, 4 }
  0x69   :  { %v660_v27 = vld [vmem:[#allocation2 + $0x20] sm:$0xf] }
  0x6a   :  { %v59_v28 = vsel %vm55_vm10, %v54_v26, %v50_v25  ;;  %78 = vst.msk [vmem:[#allocation2 + $0x2c] sm:$0xf] %vm17_vm1, %v54_v26  ;;  %669 = vrot.lane.b32.xlu2 %v660_v27, %s1283_s6  ;;  %v568_v30 = vld [vmem:[#allocation2 + $0x20] sm:$0xf]  ;;  %v469_v0 = vld [vmem:[#allocation2 + $0x18] sm:$0xff] }
  0x6b   :  { %77 = vst.msk [vmem:[#allocation2 + $0x24] sm:$0xff] %vm1361_vm11, %v59_v28  ;;  %v471_v7 = vsel %vm1349_vm4, %v469_v0, 0  ;;  %v1467_v18 = vld [vmem:[#allocation2 + $0x18] sm:$0xff] }
  0x6c   :  { %473 = vst [vmem:[#allocation3 + $0x8] sm:$0xff] %v471_v7 }
  0x6f   :  { %v421_v29 = vpop.permute.xlu2 %420 }
  0x70   :  { %v422_v33 = vrot.slane %v421_v29, 4 }
  0x71   :  { %v662_v58 = vld [vmem:[#allocation2 + $0x2c] sm:$0xf] }
  0x72   :  { %v424_v34 = vsel %vm423_vm12, %v422_v33, %v421_v29  ;;  %v432_v35 = vunpack.c.l.b16 %v422_v33  ;;  %v433_v36 = vunpack.c.h.b16 %v422_v33  ;;  %577 = vrot.lane.b32.xlu2 %v568_v30, %s1284_s7  ;;  %v470_v1 = vld [vmem:[#allocation2 + $0x24] sm:$0xff] }
  0x73   :  { %v425_v37 = vunpack.c.l.b16 %v424_v34  ;;  %v426_v38 = vunpack.c.h.b16 %v424_v34  ;;  %v472_v8 = vsel %vm1349_vm4, %v470_v1, 0  ;;  %v1500_v34 = vld [vmem:[#allocation2 + $0x24] sm:$0xff] }
  0x74   :  { %vm436_vm13 = vcmp.ne.s32.totalorder %v432_v35, %v1375_v31  ;;  %vm437_vm14 = vcmp.ne.s32.totalorder %v433_v36, %v1378_v32  ;;  %474 = vst [vmem:[#allocation3 + $0x18] sm:$0xff] %v472_v8  ;;  %v630_v8 = vld [vmem:[#allocation2 + $0x2c] sm:$0xf] }
  0x75   :  { %vm429_vm15 = vcmp.ne.s32.totalorder %v425_v37, %v1375_v31  ;;  %vm430_vm0 = vcmp.ne.s32.totalorder %v426_v38, %v1378_v32  ;;  %vm1385_vm2 = vmpackc.low %vm437_vm14, %vm436_vm13  ;;  %v628_v37 = vld [vmem:[#allocation2 + $0x20] sm:$0xf] }
  0x76   :  { %v44_v40 = vpop.permute.xlu0 %43  ;;  %vm1389_vm3 = vmpackc.low %vm430_vm0, %vm429_vm15 }
  0x77   :  { %v51_v42 = vrot.slane %v44_v40, 4 }
  0x79   :  { %v56_v43 = vsel %vm55_vm10, %v51_v42, %v44_v40  ;;  %72 = vst.msk [vmem:[#allocation2 + $0x8] sm:$0xf] %vm17_vm1, %v51_v42 }
  0x7a   :  { %71 = vst.msk [vmem:[#allocation2] sm:$0xff] %vm1361_vm11, %v56_v43 }
  0x7d   :  { %v1397_v44 = vpop.permute.xlu1 %339 }
  0x7e   :  { %v46_v45 = vpop.permute.xlu0 %45  ;;  %v1428_v63 = vrot.slane %v1397_v44, 4 }
  0x7f   :  { %v52_v46 = vrot.slane %v46_v45, 4 }
  0x80   :  { %v388_v47 = vld [vmem:[#allocation2 + $0x8] sm:$0xf]  ;;  %v351_v9 = vunpack.c.l.b16 %v1428_v63  ;;  %v352_v10 = vunpack.c.h.b16 %v1428_v63 }
  0x81   :  { %v57_v48 = vsel %vm55_vm10, %v52_v46, %v46_v45  ;;  %74 = vst.msk [vmem:[#allocation2 + $0x14] sm:$0xf] %vm17_vm1, %v52_v46  ;;  %397 = vrot.lane.b32.xlu1 %v388_v47, %s1283_s6  ;;  %v1402_v49 = vld [vmem:[#allocation2] sm:$0xff]  ;;  %v255_v53 = vld [vmem:[#allocation2 + $0x8] sm:$0xf]  ;;  %vm156_vm1 = vcmask 15360  }
  0x82   :  { %73 = vst.msk [vmem:[#allocation2 + $0xc] sm:$0xff] %vm1361_vm11, %v57_v48  ;;  %v439_v50 = vsel %vm1389_vm3, %v1402_v49, 0  ;;  %v113_v51 = vsel %vm1349_vm4, %v1402_v49, 0  ;;  %v118_v11 = vld [vmem:[#allocation2 + $0x8] sm:$0xf]  ;;  %vm356_vm8 = vcmp.ne.s32.totalorder %v352_v10, %v1378_v32 }
  0x83   :  { %115 = vst [vmem:[#allocation3] sm:$0xff] %v113_v51  ;;  %v336_v19 = vld [vmem:[#allocation2 + $0x8] sm:$0xf]  ;;  %v598_v51 = vld [vmem:[#allocation2 + $0x2c] sm:$0xf] }
  0x84   :  { %v148_v42 = vld [vmem:[#allocation2 + $0x8] sm:$0xf] }
  0x85   :  { %v1412_v52 = vpop.permute.xlu1 %287  ;;  %v202_v0 = vld [vmem:[#allocation2 + $0x8] sm:$0xf] }
  0x86   :  { %v289_v13 = vrot.slane %v1412_v52, 4  ;;  %v1465_v17 = vpop.permute.xlu0 %206 }
  0x87   :  { %v208_v21 = vrot.slane %v1465_v17, 4 }
  0x88   :  { %v390_v54 = vld [vmem:[#allocation2 + $0x14] sm:$0xf]  ;;  %v299_v15 = vunpack.c.l.b16 %v289_v13  ;;  %v300_v16 = vunpack.c.h.b16 %v289_v13 }
  0x89   :  { %264 = vrot.lane.b32.xlu1 %v255_v53, %s1284_s7  ;;  %401 = vrot.lane.b32.xlu0 %v390_v54, %s1283_s6  ;;  %v1416_v55 = vld [vmem:[#allocation2 + $0xc] sm:$0xff]  ;;  %v257_v60 = vld [vmem:[#allocation2 + $0x14] sm:$0xf]  ;;  %v218_v23 = vunpack.c.l.b16 %v208_v21  ;;  %v219_v24 = vunpack.c.h.b16 %v208_v21 }
  0x8a   :  { %399 = vrot.lane.b32.xlu2 %v1416_v55, %s1283_s6  ;;  %v441_v3 = vsel %vm1389_vm3, %v1416_v55, 0  ;;  %v114_v6 = vsel %vm1349_vm4, %v1416_v55, 0  ;;  %v120_v12 = vld [vmem:[#allocation2 + $0x14] sm:$0xf]  ;;  %vm355_vm4 = vcmp.ne.s32.totalorder %v351_v9, %v1375_v31  ;;  %vm303_vm10 = vcmp.ne.s32.totalorder %v299_v15, %v1375_v31 }
  0x8b   :  { %116 = vst [vmem:[#allocation3 + $0x10] sm:$0xff] %v114_v6  ;;  %vm1461_vm9 = vmpackc.low %vm356_vm8, %vm355_vm4  ;;  %vm304_vm11 = vcmp.ne.s32.totalorder %v300_v16, %v1378_v32  ;;  %v286_v25 = vld [vmem:[#allocation2 + $0x14] sm:$0xf]  ;;  %vm222_vm13 = vcmp.ne.s32.totalorder %v218_v23, %v1375_v31  ;;  %vm223_vm14 = vcmp.ne.s32.totalorder %v219_v24, %v1378_v32  ;;  %vm290_vm4 = vcmask 146432   ;;  %v690_v24 = vld [vmem:[#allocation2 + $0x2c] sm:$0xf] }
  0x8c   :  { %v359_v20 = vsel %vm1461_vm9, %v336_v19, 0  ;;  %vm1479_vm12 = vmpackc.low %vm304_vm11, %vm303_vm10  ;;  %v338_v27 = vld [vmem:[#allocation2 + $0x14] sm:$0xf]  ;;  %v632_v40 = vsel %vm1461_vm9, %v628_v37, 0  ;;  %v291_v46 = vsel %vm290_vm4, %v289_v13, %v1412_v52  ;;  %vm209_vm8 = vcmask 130048  }
  0x8d   :  { %v154_v56 = vpop.permute.xlu1 %153  ;;  %v309_v26 = vsel %vm1479_vm12, %v286_v25, 0  ;;  %vm1492_vm15 = vmpackc.low %vm223_vm14, %vm222_vm13  ;;  %v361_v33 = vsel %vm1461_vm9, %v338_v27, 0  ;;  %v204_v35 = vld [vmem:[#allocation2 + $0x14] sm:$0xf]  ;;  %v292_v53 = vunpack.c.l.b16 %v291_v46  ;;  %v293_v54 = vunpack.c.h.b16 %v291_v46  ;;  %v570_v25 = vld [vmem:[#allocation2 + $0x2c] sm:$0xf] }
  0x8e   :  { %v1420_v57 = vrot.slane %v154_v56, 4  ;;  %v228_v36 = vsel %vm1492_vm15, %v204_v35, 0  ;;  %v210_v52 = vsel %vm209_vm8, %v208_v21, %v1465_v17  ;;  %v226_v6 = vsel %vm1492_vm15, %v202_v0, 0  ;;  %v417_v46 = vld [vmem:[#allocation2 + $0x8] sm:$0xf] }
  0x8f   :  { %vm296_vm13 = vcmp.ne.s32.totalorder %v292_v53, %v1375_v31  ;;  %vm297_vm14 = vcmp.ne.s32.totalorder %v293_v54, %v1378_v32  ;;  %v440_v53 = vsel %vm1385_vm2, %v417_v46, 0 }
  0x90   :  { %v157_v59 = vsel %vm156_vm1, %v1420_v57, %v154_v56  ;;  %v165_v29 = vunpack.c.l.b16 %v1420_v57  ;;  %v166_v30 = vunpack.c.h.b16 %v1420_v57  ;;  %v150_v56 = vld [vmem:[#allocation2 + $0x14] sm:$0xf]  ;;  %v284_v57 = vld [vmem:[#allocation2 + $0x8] sm:$0xf] }
  0x91   :  { %v158_v61 = vunpack.c.l.b16 %v157_v59  ;;  %v159_v62 = vunpack.c.h.b16 %v157_v59  ;;  %673 = vrot.lane.b32.xlu1 %v662_v58, %s1283_s6  ;;  %268 = vrot.lane.b32.xlu0 %v257_v60, %s1284_s7  ;;  %v307_v59 = vsel %vm1479_vm12, %v284_v57, 0 }
  0x92   :  { %266 = vrot.lane.b32.xlu2 %v1416_v55, %s1284_s7  ;;  %vm169_vm0 = vcmp.ne.s32.totalorder %v165_v29, %v1375_v31  ;;  %vm170_vm1 = vcmp.ne.s32.totalorder %v166_v30, %v1378_v32  ;;  %v693_v30 = vsel %vm1389_vm3, %v1500_v34, 0 }
  0x93   :  { %vm162_vm5 = vcmp.ne.s32.totalorder %v158_v61, %v1375_v31  ;;  %vm163_vm6 = vcmp.ne.s32.totalorder %v159_v62, %v1378_v32  ;;  %v211_v62 = vunpack.c.l.b16 %v210_v52 }
  0x94   :  { %vm1432_vm7 = vmpackc.low %vm163_vm6, %vm162_vm5  ;;  %vm342_vm6 = vcmask 261120  }
  0x95   :  { %v172_v4 = vsel %vm1432_vm7, %v1402_v49, 0  ;;  %v174_v5 = vsel %vm1432_vm7, %v1416_v55, 0  ;;  %vm1510_vm5 = vmpackc.low %vm170_vm1, %vm169_vm0  ;;  %v343_v45 = vsel %vm342_vm6, %v1428_v63, %v1397_v44  ;;  %v602_v44 = vsel %vm1479_vm12, %v598_v51, 0 }
  0x96   :  { %v173_v43 = vsel %vm1510_vm5, %v148_v42, 0  ;;  %v344_v47 = vunpack.c.l.b16 %v343_v45  ;;  %v345_v48 = vunpack.c.h.b16 %v343_v45  ;;  %v175_v58 = vsel %vm1510_vm5, %v150_v56, 0  ;;  %vm1544_vm1 = vmpackc.low %vm297_vm14, %vm296_vm13  ;;  %v688_v42 = vld [vmem:[#allocation2 + $0x20] sm:$0xf] }
  0x97   :  { %v212_v63 = vunpack.c.h.b16 %v210_v52  ;;  %v306_v7 = vsel %vm1544_vm1, %v1402_v49, 0  ;;  %vm215_vm6 = vcmp.ne.s32.totalorder %v211_v62, %v1375_v31  ;;  %v308_v10 = vsel %vm1544_vm1, %v1416_v55, 0 }
  0x98   :  { %vm348_vm10 = vcmp.ne.s32.totalorder %v344_v47, %v1375_v31  ;;  %vm349_vm11 = vcmp.ne.s32.totalorder %v345_v48, %v1378_v32  ;;  %v599_v19 = vsel %vm1544_vm1, %v1467_v18, 0  ;;  %v601_v22 = vsel %vm1544_vm1, %v1500_v34, 0 }
  0x99   :  { %127 = vrot.lane.b32.xlu1 %v118_v11, %s1285_s8  ;;  %131 = vrot.lane.b32.xlu0 %v120_v12, %s1285_s8  ;;  %vm1540_vm0 = vmpackc.low %vm349_vm11, %vm348_vm10  ;;  %vm216_vm4 = vcmp.ne.s32.totalorder %v212_v63, %v1378_v32  ;;  %v634_v11 = vsel %vm1461_vm9, %v630_v8, 0  ;;  %v596_v32 = vld [vmem:[#allocation2 + $0x20] sm:$0xf]  ;;  %vm137_vm9 = vcmask 1043456   ;;  %v692_v48 = vsel %vm1385_vm2, %v688_v42, 0 }
  0x9a   :  { %129 = vrot.lane.b32.xlu2 %v1416_v55, %s1285_s8  ;;  %v358_v1 = vsel %vm1540_vm0, %v1402_v49, 0  ;;  %vm1561_vm10 = vmpackc.low %vm216_vm4, %vm215_vm6  ;;  %v600_v13 = vsel %vm1479_vm12, %v596_v32, 0  ;;  %v633_v15 = vsel %vm1540_vm0, %v1500_v34, 0  ;;  %v360_v17 = vsel %vm1540_vm0, %v1416_v55, 0  ;;  %v419_v8 = vld [vmem:[#allocation2 + $0x14] sm:$0xf] }
  0x9b   :  { %v225_v31 = vsel %vm1561_vm10, %v1402_v49, 0  ;;  %v227_v14 = vsel %vm1561_vm10, %v1416_v55, 0  ;;  %v631_v21 = vsel %vm1540_vm0, %v1467_v18, 0  ;;  %vm408_vm12 = vcmask 777216  }
  0x9c   :  { %vm275_vm11 = vcmask 908288   ;;  %v539_v60 = vsel %vm1561_vm10, %v1467_v18, 0  ;;  %v507_v61 = vsel %vm1432_vm7, %v1467_v18, 0  ;;  %vm139_vm13 = vcmask 1039360  }
  0xa1   :  { %667 = vrot.lane.b32.xlu1 %v1467_v18, %s1283_s6  ;;  %395 = vrot.lane.b32.xlu0 %v1402_v49, %s1283_s6 }
  0xa2   :  { %368 = vrot.lane.b32.xlu2 %v359_v20, %s1286_s9 }
  0xa9   :  { %575 = vrot.lane.b32.xlu1 %v1467_v18, %s1284_s7  ;;  %262 = vrot.lane.b32.xlu0 %v1402_v49, %s1284_s7 }
  0xaa   :  { %320 = vrot.lane.b32.xlu2 %v309_v26, %s1287_s10  ;;  %v694_v26 = vsel %vm1385_vm2, %v690_v24, 0 }
  0xb1   :  { %372 = vrot.lane.b32.xlu1 %v361_v33, %s1286_s9  ;;  %671 = vrot.lane.b32.xlu0 %v1500_v34, %s1283_s6 }
  0xb2   :  { %239 = vrot.lane.b32.xlu2 %v228_v36, %s1288_s11 }
  0xb9   :  { %641 = vrot.lane.b32.xlu1 %v632_v40, %s1286_s9  ;;  %125 = vrot.lane.b32.xlu0 %v1402_v49, %s1285_s8  ;;  %v506_v49 = vld [vmem:[#allocation2 + $0x2c] sm:$0xf] }
  0xba   :  { %182 = vrot.lane.b32.xlu2 %v173_v43, %s1289_s12  ;;  %v536_v43 = vld [vmem:[#allocation2 + $0x20] sm:$0xf] }
  0xbb   :  { %v540_v51 = vsel %vm1492_vm15, %v536_v43, 0 }
  0xc1   :  { %186 = vrot.lane.b32.xlu1 %v175_v58, %s1289_s12  ;;  %316 = vrot.lane.b32.xlu0 %v307_v59, %s1287_s10 }
  0xc2   :  { %613 = vrot.lane.b32.xlu2 %v602_v44, %s1287_s10 }
  0xc4   :  { %v1570_v12 = vpop.permute.xlu2 %669 }
  0xc9   :  { %366 = vrot.lane.b32.xlu1 %v358_v1, %s1286_s9  ;;  %235 = vrot.lane.b32.xlu0 %v226_v6, %s1288_s11 }
  0xca   :  { %314 = vrot.lane.b32.xlu2 %v306_v7, %s1287_s10  ;;  %v538_v7 = vld [vmem:[#allocation2 + $0x2c] sm:$0xf] }
  0xcc   :  { %v1589_v16 = vpop.permute.xlu2 %577 }
  0xcd   :  { %v584_v24 = vrot.slane %v1589_v16, 4 }
  0xd1   :  { %318 = vrot.lane.b32.xlu1 %v308_v10, %s1287_s10  ;;  %645 = vrot.lane.b32.xlu0 %v634_v11, %s1286_s9  ;;  %v542_v10 = vsel %vm1492_vm15, %v538_v7, 0  ;;  %v442_v11 = vsel %vm1385_vm2, %v419_v8, 0  ;;  %vm327_vm2 = vcmask 900096   ;;  %vm193_vm15 = vcmask 1031168  }
  0xd2   :  { %233 = vrot.lane.b32.xlu2 %v225_v31, %s1288_s11  ;;  %v510_v31 = vsel %vm1510_vm5, %v506_v49, 0 }
  0xd9   :  { %609 = vrot.lane.b32.xlu0 %v600_v13, %s1287_s10  ;;  %237 = vrot.lane.b32.xlu1 %v227_v14, %s1288_s11  ;;  %v676_v14 = vrot.slane %v1570_v12, 4 }
  0xda   :  { %643 = vrot.lane.b32.xlu2 %v633_v15, %s1286_s9 }
  0xe1   :  { %370 = vrot.lane.b32.xlu0 %v360_v17, %s1286_s9  ;;  %180 = vrot.lane.b32.xlu1 %v172_v4, %s1289_s12  ;;  %v691_v4 = vsel %vm1389_vm3, %v1467_v18, 0  ;;  %vm379_vm3 = vcmask 785408  }
  0xe2   :  { %607 = vrot.lane.b32.xlu2 %v599_v19, %s1287_s10 }
  0xe4   :  { %v400_v20 = vpop.permute.xlu2 %399 }
  0xe5   :  { %v405_v36 = vrot.slane %v400_v20, 4 }
  0xe9   :  { %639 = vrot.lane.b32.xlu0 %v631_v21, %s1286_s9  ;;  %611 = vrot.lane.b32.xlu1 %v601_v22, %s1287_s10 }
  0xea   :  { %699 = vrot.lane.b32.xlu2 %v691_v4, %s1290_s13  ;;  %v509_v4 = vsel %vm1432_vm7, %v1500_v34, 0  ;;  %vm246_vm7 = vcmask 916480  }
  0xec   :  { %v267_v23 = vpop.permute.xlu2 %266 }
  0xed   :  { %v272_v57 = vrot.slane %v267_v23, 4 }
  0xf1   :  { %184 = vrot.lane.b32.xlu0 %v174_v5, %s1289_s12  ;;  %581 = vrot.lane.b32.xlu1 %v570_v25, %s1284_s7  ;;  %v541_v5 = vsel %vm1561_vm10, %v1500_v34, 0 }
  0xf2   :  { %705 = vrot.lane.b32.xlu2 %v694_v26, %s1290_s13 }
  0xf3   :  { %v1625_v27 = vpop.permute.xlu1 %397 }
  0xf4   :  { %v130_v29 = vpop.permute.xlu2 %129  ;;  %v404_v28 = vrot.slane %v1625_v27, 4  ;;  %v504_v27 = vld [vmem:[#allocation2 + $0x20] sm:$0xf] }
  0xf5   :  { %v135_v0 = vrot.slane %v130_v29, 4  ;;  %v508_v16 = vsel %vm1510_vm5, %v504_v27, 0  ;;  %vm460_vm5 = vcmask 769024  }
  0xf9   :  { %579 = vrot.lane.b32.xlu0 %v1500_v34, %s1284_s7  ;;  %703 = vrot.lane.b32.xlu1 %v693_v30, %s1290_s13  ;;  %v476_v30 = vld [vmem:[#allocation2 + $0x20] sm:$0xf] }
  0xfa   :  { %551 = vrot.lane.b32.xlu2 %v541_v5, %s1288_s11 }
  0xfb   :  { %v1637_v33 = vpop.permute.xlu1 %264  ;;  %v402_v35 = vpop.permute.xlu0 %401 }
  0xfc   :  { %v406_v37 = vrot.slane %v402_v35, 4  ;;  %v1639_v40 = vpop.permute.xlu2 %368  ;;  %v271_v25 = vrot.slane %v1637_v33, 4 }
  0xfd   :  { %v375_v7 = vrot.slane %v1639_v40, 4 }
  0xfe   :  { %v410_v45 = vsel %vm137_vm9, %v405_v36, %v406_v37 }
  0xff   :  { %v411_v47 = vsel %vm408_vm12, %v400_v20, %v410_v45 }
 0x100   :  { %415 = vst [vmem:[#allocation3 + $0xf0] sm:$0xff] %v411_v47 }
 0x101   :  { %701 = vrot.lane.b32.xlu0 %v692_v48, %s1290_s13  ;;  %549 = vrot.lane.b32.xlu1 %v540_v51, %s1288_s11 }
 0x102   :  { %449 = vrot.lane.b32.xlu2 %v440_v53, %s1290_s13 }
 0x103   :  { %v1652_v54 = vpop.permute.xlu1 %673  ;;  %v269_v56 = vpop.permute.xlu0 %268 }
 0x104   :  { %v273_v58 = vrot.slane %v269_v56, 4  ;;  %v1654_v59 = vpop.permute.xlu2 %320  ;;  %v678_v46 = vrot.slane %v1652_v54, 4 }
 0x106   :  { %v277_v44 = vsel %vm137_vm9, %v272_v57, %v273_v58 }
 0x107   :  { %v278_v52 = vsel %vm275_vm11, %v267_v23, %v277_v44  ;;  %v1253_v5 = vld [vmem:[#allocation3 + $0xec] sm:$0xf0] }
 0x108   :  { %282 = vst [vmem:[#allocation3 + $0x90] sm:$0xff] %v278_v52  ;;  %v478_v52 = vld [vmem:[#allocation2 + $0x2c] sm:$0xf] }
 0x109   :  { %547 = vrot.lane.b32.xlu0 %v539_v60, %s1288_s11  ;;  %447 = vrot.lane.b32.xlu1 %v439_v50, %s1290_s13 }
 0x10a   :  { %515 = vrot.lane.b32.xlu2 %v507_v61, %s1289_s12 }
 0x10b   :  { %v1671_v62 = vpop.permute.xlu1 %127  ;;  %v132_v63 = vpop.permute.xlu0 %131 }
 0x10c   :  { %v136_v1 = vrot.slane %v132_v63, 4  ;;  %v1673_v6 = vpop.permute.xlu2 %239  ;;  %v134_v57 = vrot.slane %v1671_v62, 4 }
 0x10e   :  { %v141_v9 = vsel %vm137_vm9, %v135_v0, %v136_v1 }
 0x10f   :  { %v142_v50 = vsel %vm139_vm13, %v130_v29, %v141_v9 }
 0x110   :  { %146 = vst [vmem:[#allocation3 + $0x30] sm:$0xff] %v142_v50 }
 0x111   :  { %553 = vrot.lane.b32.xlu0 %v542_v10, %s1288_s11  ;;  %453 = vrot.lane.b32.xlu1 %v442_v11, %s1290_s13 }
 0x112   :  { %521 = vrot.lane.b32.xlu2 %v510_v31, %s1289_s12 }
 0x113   :  { %v668_v32 = vpop.permute.xlu1 %667  ;;  %v396_v13 = vpop.permute.xlu0 %395 }
 0x114   :  { %v675_v15 = vrot.slane %v668_v32, 4  ;;  %v403_v17 = vrot.slane %v396_v13, 4  ;;  %v1690_v20 = vpop.permute.xlu2 %182 }
 0x116   :  { %v679_v39 = vsel %vm137_vm9, %v675_v15, %v676_v14  ;;  %v407_v19 = vsel %vm137_vm9, %v403_v17, %v404_v28  ;;  %v325_v15 = vrot.slane %v1654_v59, 4 }
 0x117   :  { %v680_v21 = vsel %vm408_vm12, %v668_v32, %v679_v39  ;;  %v409_v22 = vsel %vm408_vm12, %v396_v13, %v407_v19 }
 0x118   :  { %685 = vst [vmem:[#allocation3 + $0xe8] sm:$0xff] %v680_v21 }
 0x119   :  { %414 = vst [vmem:[#allocation3 + $0xe0] sm:$0xff] %v409_v22  ;;  %451 = vrot.lane.b32.xlu0 %v441_v3, %s1290_s13  ;;  %519 = vrot.lane.b32.xlu1 %v509_v4, %s1289_s12 }
 0x11a   :  { %487 = vrot.lane.b32.xlu2 %v1500_v34, %s1285_s8  ;;  %v1189_v34 = vld [vmem:[#allocation3 + $0xf0] sm:$0xf0] }
 0x11b   :  { %v576_v12 = vpop.permute.xlu1 %575  ;;  %v263_v23 = vpop.permute.xlu0 %262 }
 0x11c   :  { %v583_v2 = vrot.slane %v576_v12, 4  ;;  %v270_v26 = vrot.slane %v263_v23, 4  ;;  %v1711_v35 = vpop.permute.xlu2 %613 }
 0x11e   :  { %v587_v29 = vsel %vm137_vm9, %v583_v2, %v584_v24  ;;  %v274_v41 = vsel %vm137_vm9, %v270_v26, %v271_v25  ;;  %v244_v2 = vrot.slane %v1673_v6, 4 }
 0x11f   :  { %v588_v55 = vsel %vm275_vm11, %v576_v12, %v587_v29  ;;  %v276_v3 = vsel %vm275_vm11, %v263_v23, %v274_v41 }
 0x120   :  { %593 = vst [vmem:[#allocation3 + $0x88] sm:$0xff] %v588_v55  ;;  %v1187_v33 = vld [vmem:[#allocation3 + $0xe0] sm:$0xf]  ;;  %v1251_v36 = vld [vmem:[#allocation3 + $0xe4] sm:$0xf] }
 0x121   :  { %281 = vst [vmem:[#allocation3 + $0x80] sm:$0xff] %v276_v3  ;;  %517 = vrot.lane.b32.xlu0 %v508_v16, %s1289_s12  ;;  %485 = vrot.lane.b32.xlu1 %v476_v30, %s1285_s8  ;;  %v1188_v37 = vor.u32 %v1253_v5, %v1187_v33  ;;  %v1192_v42 = vor.u32 %v1251_v36, %v1189_v34  ;;  %v189_v30 = vrot.slane %v1690_v20, 4 }
 0x123   :  { %952 = vmatpush.bf16.msra.mxu0 %v1188_v37  ;;  %978 = vmatpush.bf16.msra.mxu2 %v1192_v42  ;;  %v1717_v43 = vpop.permute.xlu1 %372  ;;  %v672_v45 = vpop.permute.xlu0 %671 }
 0x124   :  { %v677_v47 = vrot.slane %v672_v45, 4  ;;  %v315_v51 = vpop.permute.xlu2 %314  ;;  %v377_v16 = vrot.slane %v1717_v43, 4 }
 0x125   :  { %v322_v63 = vrot.slane %v315_v51, 4 }
 0x126   :  { %v681_v38 = vsel %vm137_vm9, %v677_v47, %v678_v46 }
 0x127   :  { %v682_v48 = vsel %vm408_vm12, %v672_v45, %v681_v38  ;;  %v618_v38 = vrot.slane %v1711_v35, 4 }
 0x128   :  { %686 = vst [vmem:[#allocation3 + $0xf8] sm:$0xff] %v682_v48 }
 0x129   :  { %483 = vrot.lane.b32.xlu0 %v1467_v18, %s1285_s8 }
 0x12b   :  { %v1724_v53 = vpop.permute.xlu1 %641  ;;  %v126_v56 = vpop.permute.xlu0 %125 }
 0x12c   :  { %v133_v58 = vrot.slane %v126_v56, 4  ;;  %v234_v0 = vpop.permute.xlu2 %233  ;;  %v648_v43 = vrot.slane %v1724_v53, 4 }
 0x12d   :  { %v241_v49 = vrot.slane %v234_v0, 4 }
 0x12e   :  { %v138_v44 = vsel %vm137_vm9, %v133_v58, %v134_v57 }
 0x12f   :  { %v140_v54 = vsel %vm139_vm13, %v126_v56, %v138_v44 }
 0x130   :  { %145 = vst [vmem:[#allocation3 + $0x20] sm:$0xff] %v140_v54 }
 0x131   :  { %489 = vrot.lane.b32.xlu0 %v478_v52, %s1285_s8 }
 0x133   :  { %v1730_v60 = vpop.permute.xlu1 %186  ;;  %v317_v61 = vpop.permute.xlu0 %316 }
 0x134   :  { %v323_v18 = vrot.slane %v317_v61, 4  ;;  %v644_v32 = vpop.permute.xlu2 %643 }
 0x135   :  { %v649_v17 = vrot.slane %v644_v32, 4 }
 0x136   :  { %v326_v1 = vsel %vm137_vm9, %v322_v63, %v323_v18 }
 0x137   :  { %v328_v62 = vsel %vm327_vm2, %v315_v51, %v326_v1 }
 0x138   :  { %333 = vst [vmem:[#allocation3 + $0xa0] sm:$0xff] %v328_v62 }
 0x13b   :  { %v367_v8 = vpop.permute.xlu1 %366  ;;  %v236_v9 = vpop.permute.xlu0 %235 }
 0x13c   :  { %v374_v50 = vrot.slane %v367_v8, 4  ;;  %v242_v10 = vrot.slane %v236_v9, 4  ;;  %v608_v23 = vpop.permute.xlu2 %607 }
 0x13d   :  { %v615_v26 = vrot.slane %v608_v23, 4 }
 0x13e   :  { %v378_v11 = vsel %vm137_vm9, %v374_v50, %v375_v7  ;;  %v245_v31 = vsel %vm137_vm9, %v241_v49, %v242_v10 }
 0x13f   :  { %v380_v13 = vsel %vm379_vm3, %v367_v8, %v378_v11  ;;  %v247_v14 = vsel %vm246_vm7, %v234_v0, %v245_v31  ;;  %v191_v8 = vrot.slane %v1730_v60, 4  ;;  %v1155_v49 = vld [vmem:[#allocation3 + $0xa0] sm:$0xf]  ;;  %v1243_v50 = vld [vmem:[#allocation3 + $0xa4] sm:$0xf] }
 0x140   :  { %385 = vst [vmem:[#allocation3 + $0xc0] sm:$0xff] %v380_v13  ;;  %v1239_v13 = vld [vmem:[#allocation3 + $0x84] sm:$0xf] }
 0x141   :  { %252 = vst [vmem:[#allocation3 + $0x60] sm:$0xff] %v247_v14 }
 0x143   :  { %v319_v28 = vpop.permute.xlu1 %318  ;;  %v646_v40 = vpop.permute.xlu0 %645 }
 0x144   :  { %v324_v39 = vrot.slane %v319_v28, 4  ;;  %v650_v19 = vrot.slane %v646_v40, 4  ;;  %v1751_v36 = vpop.permute.xlu2 %699  ;;  %v1141_v40 = vld [vmem:[#allocation3 + $0x90] sm:$0xf0] }
 0x146   :  { %v329_v21 = vsel %vm137_vm9, %v324_v39, %v325_v15  ;;  %v653_v22 = vsel %vm137_vm9, %v649_v17, %v650_v19  ;;  %v1144_v17 = vor.u32 %v1239_v13, %v1141_v40 }
 0x147   :  { %v330_v4 = vsel %vm327_vm2, %v319_v28, %v329_v21  ;;  %v654_v12 = vsel %vm379_vm3, %v644_v32, %v653_v22  ;;  %v1171_v54 = vld [vmem:[#allocation3 + $0xc0] sm:$0xf]  ;;  %v1247_v52 = vld [vmem:[#allocation3 + $0xc4] sm:$0xf]  ;;  %v1241_v28 = vld [vmem:[#allocation3 + $0x8c] sm:$0xf0] }
 0x148   :  { %334 = vst [vmem:[#allocation3 + $0xb0] sm:$0xff] %v330_v4  ;;  %v1139_v32 = vld [vmem:[#allocation3 + $0x80] sm:$0xf] }
 0x149   :  { %658 = vst [vmem:[#allocation3 + $0xd8] sm:$0xff] %v654_v12  ;;  %v1140_v15 = vor.u32 %v1241_v28, %v1139_v32  ;;  %v1123_v4 = vld [vmem:[#allocation3 + $0x60] sm:$0xf] }
 0x14b   :  { %v238_v24 = vpop.permute.xlu1 %237  ;;  %v610_v25 = vpop.permute.xlu0 %609 }
 0x14c   :  { %v243_v59 = vrot.slane %v238_v24, 4  ;;  %v616_v27 = vrot.slane %v610_v25, 4  ;;  %v706_v61 = vpop.permute.xlu2 %705 }
 0x14d   :  { %v710_v12 = vrot.slane %v706_v61, 4 }
 0x14e   :  { %v248_v29 = vsel %vm137_vm9, %v243_v59, %v244_v2  ;;  %v619_v41 = vsel %vm137_vm9, %v615_v26, %v616_v27  ;;  %v1235_v2 = vld [vmem:[#allocation3 + $0x64] sm:$0xf] }
 0x14f   :  { %v249_v55 = vsel %vm246_vm7, %v238_v24, %v248_v29  ;;  %v620_v3 = vsel %vm327_vm2, %v608_v23, %v619_v41  ;;  %v1245_v53 = vld [vmem:[#allocation3 + $0xac] sm:$0xf0]  ;;  %v1157_v1 = vld [vmem:[#allocation3 + $0xb0] sm:$0xf0] }
 0x150   :  { %253 = vst [vmem:[#allocation3 + $0x70] sm:$0xff] %v249_v55  ;;  %v1156_v10 = vor.u32 %v1245_v53, %v1155_v49  ;;  %v1160_v11 = vor.u32 %v1243_v50, %v1157_v1  ;;  %v719_v53 = vld [vmem:[%s1833_s1] sm:$0xff]  ;;  %v1197_v50 = vld [vmem:[#allocation3 + $0xf8] sm:$0xf0] }
 0x151   :  { %625 = vst [vmem:[#allocation3 + $0xa8] sm:$0xff] %v620_v3 }
 0x153   :  { %v181_v5 = vpop.permute.xlu1 %180  ;;  %v371_v34 = vpop.permute.xlu0 %370 }
 0x154   :  { %v188_v6 = vrot.slane %v181_v5, 4  ;;  %v376_v33 = vrot.slane %v371_v34, 4  ;;  %v1766_v39 = vpop.permute.xlu2 %551 }
 0x156   :  { %v192_v37 = vsel %vm137_vm9, %v188_v6, %v189_v30  ;;  %v381_v42 = vsel %vm137_vm9, %v376_v33, %v377_v16  ;;  %v1091_v33 = vld [vmem:[#allocation3 + $0x20] sm:$0xf] }
 0x157   :  { %v194_v45 = vsel %vm193_vm15, %v181_v5, %v192_v37  ;;  %v382_v46 = vsel %vm379_vm3, %v371_v34, %v381_v42  ;;  %v1237_v60 = vld [vmem:[#allocation3 + $0x6c] sm:$0xf0]  ;;  %v1125_v19 = vld [vmem:[#allocation3 + $0x70] sm:$0xf0]  ;;  %v1227_v37 = vld [vmem:[#allocation3 + $0x24] sm:$0xf] }
 0x158   :  { %199 = vst [vmem:[#allocation3 + $0x40] sm:$0xff] %v194_v45  ;;  %v1124_v26 = vor.u32 %v1237_v60, %v1123_v4  ;;  %v1128_v59 = vor.u32 %v1235_v2, %v1125_v19  ;;  %v764_v60 = vunpack.c.h.b16 %v719_v53 }
 0x159   :  { %386 = vst [vmem:[#allocation3 + $0xd0] sm:$0xff] %v382_v46  ;;  %v707_v46 = vrot.slane %v1751_v36, 4 }
 0x15b   :  { %v612_v20 = vpop.permute.xlu1 %611  ;;  %v640_v47 = vpop.permute.xlu0 %639 }
 0x15c   :  { %v617_v48 = vrot.slane %v612_v20, 4  ;;  %v647_v51 = vrot.slane %v640_v47, 4 }
 0x15e   :  { %v621_v56 = vsel %vm137_vm9, %v617_v48, %v618_v38  ;;  %v651_v57 = vsel %vm137_vm9, %v647_v51, %v648_v43  ;;  %v1093_v38 = vld [vmem:[#allocation3 + $0x30] sm:$0xf0]  ;;  %v450_v43 = vpop.permute.xlu2 %449 }
 0x15f   :  { %v622_v58 = vsel %vm327_vm2, %v612_v20, %v621_v56  ;;  %v652_v44 = vsel %vm379_vm3, %v640_v47, %v651_v57  ;;  %v1107_v41 = vld [vmem:[#allocation3 + $0x40] sm:$0xf]  ;;  %v1231_v5 = vld [vmem:[#allocation3 + $0x44] sm:$0xf]  ;;  %v1229_v47 = vld [vmem:[#allocation3 + $0x2c] sm:$0xf0]  ;;  %v1096_v51 = vor.u32 %v1227_v37, %v1093_v38 }
 0x160   :  { %626 = vst [vmem:[#allocation3 + $0xb8] sm:$0xff] %v622_v58  ;;  %v1249_v63 = vld [vmem:[#allocation3 + $0xcc] sm:$0xf0]  ;;  %v1173_v18 = vld [vmem:[#allocation3 + $0xd0] sm:$0xf0]  ;;  %v1092_v48 = vor.u32 %v1229_v47, %v1091_v33 }
 0x161   :  { %657 = vst [vmem:[#allocation3 + $0xc8] sm:$0xff] %v652_v44  ;;  %v1172_v35 = vor.u32 %v1249_v63, %v1171_v54  ;;  %v1176_v0 = vor.u32 %v1247_v52, %v1173_v18  ;;  %v1225_v57 = vld [vmem:[#allocation3 + $0xc] sm:$0xf0]  ;;  %v1077_v58 = vld [vmem:[#allocation3 + $0x10] sm:$0xf0]  ;;  %v456_v18 = vrot.slane %v450_v43, 4 }
 0x162   :  { %v1075_v54 = vld [vmem:[#allocation3] sm:$0xf]  ;;  %v1223_v52 = vld [vmem:[#allocation3 + $0x4] sm:$0xf]  ;;  %v1240_v37 = vld [vmem:[#allocation3 + $0x8c] sm:$0xf] }
 0x163   :  { %953 = vmatpush.bf16.msra.mxu0 %v1172_v35  ;;  %979 = vmatpush.bf16.msra.mxu2 %v1176_v0  ;;  %v582_v62 = vpop.permute.xlu1 %581  ;;  %v185_v7 = vpop.permute.xlu0 %184  ;;  %v1076_v61 = vor.u32 %v1225_v57, %v1075_v54  ;;  %v1080_v63 = vor.u32 %v1223_v52, %v1077_v58  ;;  %v756_v57 = vld [vmem:[%s1834_s2] sm:$0xff] }
 0x164   :  { %v190_v9 = vrot.slane %v185_v7, 4  ;;  %v586_v23 = vrot.slane %v582_v62, 4  ;;  %759 = vperm.xlu1 %1274, %v756_v57  }
 0x166   :  { %v195_v31 = vsel %vm137_vm9, %v190_v9, %v191_v8 }
 0x167   :  { %v196_v14 = vsel %vm193_vm15, %v185_v7, %v195_v31  ;;  %954 = vmatpush.bf16.msra.mxu0 %v1156_v10  ;;  %980 = vmatpush.bf16.msra.mxu2 %v1160_v11  ;;  %v1783_v11 = vpop.permute.xlu2 %515 }
 0x168   :  { %200 = vst [vmem:[#allocation3 + $0x50] sm:$0xff] %v196_v14 }
 0x16b   :  { %955 = vmatpush.bf16.msra.mxu0 %v1140_v15  ;;  %981 = vmatpush.bf16.msra.mxu2 %v1144_v17  ;;  %v704_v21 = vpop.permute.xlu1 %703  ;;  %v580_v22 = vpop.permute.xlu0 %579  ;;  %v1252_v17 = vld [vmem:[#allocation3 + $0xec] sm:$0xf] }
 0x16c   :  { %v709_v24 = vrot.slane %v704_v21, 4  ;;  %v585_v25 = vrot.slane %v580_v22, 4  ;;  %v1200_v19 = vor.u32 %v1252_v17, %v1197_v50 }
 0x16e   :  { %v713_v27 = vsel %vm137_vm9, %v709_v24, %v710_v12  ;;  %v589_v29 = vsel %vm137_vm9, %v585_v25, %v586_v23  ;;  %v557_v23 = vrot.slane %v1766_v39, 4  ;;  %v1181_v25 = vld [vmem:[#allocation3 + $0xd8] sm:$0xf0] }
 0x16f   :  { %v714_v55 = vsel %vm460_vm5, %v704_v21, %v713_v27  ;;  %v590_v3 = vsel %vm275_vm11, %v580_v22, %v589_v29  ;;  %956 = vmatpush.bf16.msra.mxu0 %v1124_v26  ;;  %982 = vmatpush.bf16.msra.mxu2 %v1128_v59  ;;  %v1233_v30 = vld [vmem:[#allocation3 + $0x4c] sm:$0xf0]  ;;  %v1109_v34 = vld [vmem:[#allocation3 + $0x50] sm:$0xf0]  ;;  %v1248_v21 = vld [vmem:[#allocation3 + $0xcc] sm:$0xf]  ;;  %v1789_v22 = vpack.c.b16 %v764_v60, %v764_v60 }
 0x170   :  { %718 = vst [vmem:[#allocation3 + $0x118] sm:$0xff] %v714_v55  ;;  %v1108_v16 = vor.u32 %v1233_v30, %v1107_v41  ;;  %v1112_v6 = vor.u32 %v1231_v5, %v1109_v34  ;;  %v1184_v2 = vor.u32 %v1248_v21, %v1181_v25  ;;  %v1165_v59 = vld [vmem:[#allocation3 + $0xb8] sm:$0xf0]  ;;  %v1244_v29 = vld [vmem:[#allocation3 + $0xac] sm:$0xf]  ;;  %v522_v41 = vpop.permute.xlu2 %521 }
 0x171   :  { %594 = vst [vmem:[#allocation3 + $0x98] sm:$0xff] %v590_v3  ;;  %v1168_v55 = vor.u32 %v1244_v29, %v1165_v59  ;;  %v526_v34 = vrot.slane %v522_v41, 4 }
 0x173   :  { %957 = vmatpush.bf16.msra.mxu0 %v1108_v16  ;;  %983 = vmatpush.bf16.msra.mxu2 %v1112_v6  ;;  %v550_v42 = vpop.permute.xlu1 %549  ;;  %v702_v45 = vpop.permute.xlu0 %701 }
 0x174   :  { %v708_v20 = vrot.slane %v702_v45, 4  ;;  %v556_v1 = vrot.slane %v550_v42, 4 }
 0x176   :  { %v711_v56 = vsel %vm137_vm9, %v707_v46, %v708_v20 }
 0x177   :  { %v712_v44 = vsel %vm460_vm5, %v1751_v36, %v711_v56  ;;  %958 = vmatpush.bf16.msra.mxu0 %v1092_v48  ;;  %984 = vmatpush.bf16.msra.mxu2 %v1096_v51  ;;  %v763_v36 = vunpack.c.l.b16 %v719_v53  ;;  %v1258_v49 = vld [vmem:[#allocation3 + $0x114] sm:$0xf0]  ;;  %v1213_v28 = vld [vmem:[#allocation3 + $0x118] sm:$0xf0]  ;;  %v523_v51 = vrot.slane %v1783_v11, 4 }
 0x178   :  { %717 = vst [vmem:[#allocation3 + $0x108] sm:$0xff] %v712_v44  ;;  %v1149_v3 = vld [vmem:[#allocation3 + $0x98] sm:$0xf0] }
 0x179   :  { %v1781_v10 = vpack.c.b16 %v763_v36, %v763_v36  ;;  %v1152_v42 = vor.u32 %v1240_v37, %v1149_v3  ;;  %v1179_v36 = vld [vmem:[#allocation3 + $0xc8] sm:$0xf]  ;;  %v1226_v37 = vld [vmem:[#allocation3 + $0x14] sm:$0xf0] }
 0x17b   :  { %959 = vmatpush.bf16.msra.mxu0 %v1076_v61  ;;  %985 = vmatpush.bf16.msra.mxu2 %v1080_v63  ;;  %v448_v35 = vpop.permute.xlu1 %447  ;;  %v548_v0 = vpop.permute.xlu0 %547  ;;  %v1254_v61 = vld [vmem:[#allocation3 + $0xf4] sm:$0xf0] }
 0x17c   :  { %v455_v62 = vrot.slane %v448_v35, 4  ;;  %v555_v7 = vrot.slane %v548_v0, 4 }
 0x17e   :  { %v459_v8 = vsel %vm137_vm9, %v455_v62, %v456_v18  ;;  %v559_v9 = vsel %vm137_vm9, %v555_v7, %v556_v1  ;;  %986 = vmatmul.bf16.vlgmr.msra.gmra.mxu2 %v1781_v10  ;;  %960 = vmatmul.bf16.vlgmr.msra.gmra.mxu0 %v1781_v10  ;;  %v1195_v1 = vld [vmem:[#allocation3 + $0xe8] sm:$0xf] }
 0x17f   :  { %v461_v31 = vsel %vm460_vm5, %v448_v35, %v459_v8  ;;  %v560_v32 = vsel %vm246_vm7, %v548_v0, %v559_v9  ;;  %v1211_v13 = vld [vmem:[#allocation3 + $0x108] sm:$0xf]  ;;  %v1256_v14 = vld [vmem:[#allocation3 + $0x10c] sm:$0xf]  ;;  %v1196_v62 = vor.u32 %v1254_v61, %v1195_v1 }
 0x180   :  { %466 = vst [vmem:[#allocation3 + $0x100] sm:$0xff] %v461_v31  ;;  %v1212_v40 = vor.u32 %v1258_v49, %v1211_v13  ;;  %v1216_v15 = vor.u32 %v1256_v14, %v1213_v28  ;;  %v1250_v49 = vld [vmem:[#allocation3 + $0xd4] sm:$0xf0] }
 0x181   :  { %565 = vst [vmem:[#allocation3 + $0x68] sm:$0xff] %v560_v32  ;;  %v1246_v14 = vld [vmem:[#allocation3 + $0xb4] sm:$0xf0] }
 0x182   :  { %1024 = vmatpush.bf16.msra.mxu3 %v1212_v40  ;;  %1050 = vmatpush.bf16.msrb.mxu0 %v1216_v15  ;;  %v488_v40 = vpop.permute.xlu2 %487  ;;  %v1163_v15 = vld [vmem:[#allocation3 + $0xa8] sm:$0xf] }
 0x183   :  { %v454_v4 = vpop.permute.xlu1 %453  ;;  %v554_v12 = vpop.permute.xlu0 %553  ;;  %v1164_v17 = vor.u32 %v1246_v14, %v1163_v15  ;;  %v493_v21 = vrot.slane %v488_v40, 4 }
 0x184   :  { %v558_v24 = vrot.slane %v554_v12, 4  ;;  %v458_v16 = vrot.slane %v454_v4, 4  ;;  %v1147_v12 = vld [vmem:[#allocation3 + $0x88] sm:$0xf] }
 0x185   :  { %1219 = vmatmul.msk.bf16.vlgmr.msra.gmra.mxu3 %vm209_vm8, %v1789_v22 }
 0x186   :  { %1030 = vmatpush.bf16.msrb.mxu3 %v1200_v19  ;;  %v561_v26 = vsel %vm137_vm9, %v557_v23, %v558_v24  ;;  %v1242_v19 = vld [vmem:[#allocation3 + $0x94] sm:$0xf0] }
 0x187   :  { %v562_v27 = vsel %vm246_vm7, %v1766_v39, %v561_v26  ;;  %v1203_v54 = vld [vmem:[#allocation3 + $0x100] sm:$0xf]  ;;  %v1255_v52 = vld [vmem:[#allocation3 + $0x104] sm:$0xf]  ;;  %v1148_v23 = vor.u32 %v1242_v19, %v1147_v12 }
 0x188   :  { %566 = vst [vmem:[#allocation3 + $0x78] sm:$0xff] %v562_v27  ;;  %v1236_v47 = vld [vmem:[#allocation3 + $0x6c] sm:$0xf] }
 0x18a   :  { %1031 = vmatpush.bf16.msrb.mxu3 %v1184_v2  ;;  %v1131_v2 = vld [vmem:[#allocation3 + $0x68] sm:$0xf] }
 0x18b   :  { %v520_v30 = vpop.permute.xlu1 %519  ;;  %v452_v5 = vpop.permute.xlu0 %451 }
 0x18c   :  { %v525_v6 = vrot.slane %v520_v30, 4  ;;  %v457_v33 = vrot.slane %v452_v5, 4 }
 0x18e   :  { %1032 = vmatpush.bf16.msrb.mxu3 %v1168_v55  ;;  %v529_v45 = vsel %vm137_vm9, %v525_v6, %v526_v34  ;;  %v462_v46 = vsel %vm137_vm9, %v457_v33, %v458_v16  ;;  %1220 = vmatmul.msk.bf16.vlgmr.msrb.gmra.mxu0 %vm209_vm8, %v1789_v22  ;;  %v1224_v16 = vld [vmem:[#allocation3 + $0xc] sm:$0xf]  ;;  %v1085_v6 = vld [vmem:[#allocation3 + $0x18] sm:$0xf0]  ;;  %v1083_v33 = vld [vmem:[#allocation3 + $0x8] sm:$0xf] }
 0x18f   :  { %v530_v39 = vsel %vm193_vm15, %v520_v30, %v529_v45  ;;  %v463_v20 = vsel %vm460_vm5, %v452_v5, %v462_v46  ;;  %v1133_v38 = vld [vmem:[#allocation3 + $0x78] sm:$0xf0]  ;;  %v1238_v25 = vld [vmem:[#allocation3 + $0x74] sm:$0xf0]  ;;  %v1084_v45 = vor.u32 %v1226_v37, %v1083_v33 }
 0x190   :  { %534 = vst [vmem:[#allocation3 + $0x58] sm:$0xff] %v530_v39  ;;  %v1136_v43 = vor.u32 %v1236_v47, %v1133_v38  ;;  %v1132_v26 = vor.u32 %v1238_v25, %v1131_v2 }
 0x191   :  { %467 = vst [vmem:[#allocation3 + $0x110] sm:$0xff] %v463_v20 }
 0x192   :  { %1033 = vmatpush.bf16.msrb.mxu3 %v1152_v42  ;;  %v1088_v42 = vor.u32 %v1224_v16, %v1085_v6 }
 0x193   :  { %v518_v48 = vpop.permute.xlu0 %517  ;;  %v486_v35 = vpop.permute.xlu1 %485 }
 0x194   :  { %v524_v56 = vrot.slane %v518_v48, 4  ;;  %v492_v8 = vrot.slane %v486_v35, 4 }
 0x196   :  { %1034 = vmatpush.bf16.msrb.mxu3 %v1136_v43  ;;  %v527_v58 = vsel %vm137_vm9, %v523_v51, %v524_v56 }
 0x197   :  { %v528_v44 = vsel %vm193_vm15, %v1783_v11, %v527_v58  ;;  %v1180_v11 = vor.u32 %v1250_v49, %v1179_v36  ;;  %v1117_v13 = vld [vmem:[#allocation3 + $0x58] sm:$0xf0]  ;;  %v1234_v27 = vld [vmem:[#allocation3 + $0x54] sm:$0xf0] }
 0x198   :  { %533 = vst [vmem:[#allocation3 + $0x48] sm:$0xff] %v528_v44  ;;  %v1257_v63 = vld [vmem:[#allocation3 + $0x10c] sm:$0xf0]  ;;  %v1205_v18 = vld [vmem:[#allocation3 + $0x110] sm:$0xf0] }
 0x199   :  { %v1204_v0 = vor.u32 %v1257_v63, %v1203_v54  ;;  %v1208_v53 = vor.u32 %v1255_v52, %v1205_v18 }
 0x19b   :  { %972 = vmatpush.bf16.msra.mxu1 %v1204_v0  ;;  %998 = vmatpush.bf16.msrb.mxu2 %v1208_v53  ;;  %v484_v7 = vpop.permute.xlu0 %483 }
 0x19c   :  { %v491_v9 = vrot.slane %v484_v7, 4 }
 0x19e   :  { %v495_v50 = vsel %vm137_vm9, %v491_v9, %v492_v8  ;;  %1217 = vmatmul.msk.bf16.vlgmr.msra.gmra.mxu1 %vm209_vm8, %v1789_v22  ;;  %1218 = vmatmul.msk.bf16.vlgmr.msrb.gmra.mxu2 %vm209_vm8, %v1789_v22 }
 0x19f   :  { %1004 = vmatpush.bf16.msrb.mxu1 %v1196_v62  ;;  %v496_v31 = vsel %vm139_vm13, %v484_v7, %v495_v50  ;;  %v1232_v32 = vld [vmem:[#allocation3 + $0x4c] sm:$0xf]  ;;  %v1115_v59 = vld [vmem:[#allocation3 + $0x48] sm:$0xf] }
 0x1a0   :  { %501 = vst [vmem:[#allocation3 + $0x28] sm:$0xff] %v496_v31  ;;  %v1120_v28 = vor.u32 %v1232_v32, %v1117_v13  ;;  %v1116_v29 = vor.u32 %v1234_v27, %v1115_v59 }
 0x1a2   :  { %1035 = vmatpush.bf16.msrb.mxu3 %v1120_v28 }
 0x1a3   :  { %1005 = vmatpush.bf16.msrb.mxu1 %v1180_v11  ;;  %v490_v60 = vpop.permute.xlu0 %489 }
 0x1a4   :  { %v494_v4 = vrot.slane %v490_v60, 4 }
 0x1a6   :  { %v497_v22 = vsel %vm137_vm9, %v493_v21, %v494_v4 }
 0x1a7   :  { %1006 = vmatpush.bf16.msrb.mxu1 %v1164_v17  ;;  %v498_v24 = vsel %vm139_vm13, %v488_v40, %v497_v22  ;;  %v1228_v41 = vld [vmem:[#allocation3 + $0x2c] sm:$0xf]  ;;  %v1099_v3 = vld [vmem:[#allocation3 + $0x28] sm:$0xf] }
 0x1a8   :  { %502 = vst [vmem:[#allocation3 + $0x38] sm:$0xff] %v498_v24 }
 0x1ab   :  { %1007 = vmatpush.bf16.msrb.mxu1 %v1148_v23 }
 0x1af   :  { %1008 = vmatpush.bf16.msrb.mxu1 %v1132_v26  ;;  %v1101_v55 = vld [vmem:[#allocation3 + $0x38] sm:$0xf0]  ;;  %v1230_v30 = vld [vmem:[#allocation3 + $0x34] sm:$0xf0] }
 0x1b0   :  { %v1104_v5 = vor.u32 %v1228_v41, %v1101_v55  ;;  %v1100_v34 = vor.u32 %v1230_v30, %v1099_v3 }
 0x1b2   :  { %1036 = vmatpush.bf16.msrb.mxu3 %v1104_v5 }
 0x1b3   :  { %1009 = vmatpush.bf16.msrb.mxu1 %v1116_v29 }
 0x1b6   :  { %1037 = vmatpush.bf16.msrb.mxu3 %v1088_v42 }
 0x1b7   :  { %1010 = vmatpush.bf16.msrb.mxu1 %v1100_v34 }
 0x1b9   :  { %1038 = vmatmul.bf16.vlgmr.msrb.gmra.mxu3 %v1781_v10 }
 0x1bb   :  { %1011 = vmatpush.bf16.msrb.mxu1 %v1084_v45 }
 0x1be   :  { %1012 = vmatmul.bf16.vlgmr.msrb.gmra.mxu1 %v1781_v10 }
 0x1d6   :  { %v760_v51 = vpop.permute.xlu1 %759 }
 0x1fb   :  { %v961_v46 = vpop.f32.mrf.mxu0 }
 0x1fc   :  { %v962_v57 = vadd.f32 %v961_v46, %v760_v51 }
 0x201   :  { %v987_v39 = vpop.f32.mrf.mxu2 }
 0x202   :  { %v988_v52 = vadd.f32 %v987_v39, %v760_v51 }
 0x203   :  { %v963_v20 = vpop.f32.mrf.mxu0 }
 0x208   :  { %v1026_v47 = vpop.f32.mrf.mxu3 }
 0x209   :  { %v989_v38 = vpop.f32.mrf.mxu2 }
 0x20b   :  { %v1052_v43 = vpop.f32.mrf.mxu0 }
 0x210   :  { %v1028_v48 = vpop.f32.mrf.mxu3 }
 0x213   :  { %v1054_v56 = vpop.f32.mrf.mxu0 }
 0x21b   :  { %v974_v58 = vpop.f32.mrf.mxu1 }
 0x21c   :  { %v975_v44 = vadd.f32 %v974_v58, %v962_v57 }
 0x21e   :  { %v1056_v54 = vmul.f32 0.1, %v975_v44 }
 0x220   :  { %v1060_v61 = vmax.f32 %v975_v44, %v1056_v54 }
 0x221   :  { %v1000_v63 = vpop.f32.mrf.mxu2 }
 0x222   :  { %v1001_v18 = vadd.f32 %v1000_v63, %v988_v52  ;;  %1064 = vst [vmem:[%s1835_s3] sm:$0xff] %v1060_v61 }
 0x223   :  { %v976_v10 = vpop.f32.mrf.mxu1 }
 0x224   :  { %v1057_v35 = vmul.f32 0.1, %v1001_v18 }
 0x226   :  { %v1061_v0 = vmax.f32 %v1001_v18, %v1057_v35 }
 0x228   :  { %1065 = vst [vmem:[%s1835_s3 + $0x8] sm:$0xff] %v1061_v0 }
 0x229   :  { %v1002_v53 = vpop.f32.mrf.mxu2 }
 0x23b   :  { %v1013_v1 = vpop.f32.mrf.mxu1 }
 0x23c   :  { %v1014_v62 = vadd.f32 %v1013_v1, %v760_v51  ;;  %v1039_v36 = vpop.f32.mrf.mxu3 }
 0x23d   :  { %v1040_v9 = vadd.f32 %v1039_v36, %v760_v51 }
 0x23e   :  { %v1027_v7 = vadd.f32 %v1026_v47, %v1014_v62 }
 0x23f   :  { %v1053_v50 = vadd.f32 %v1052_v43, %v1040_v9 }
 0x240   :  { %v1058_v8 = vmul.f32 0.1, %v1027_v7 }
 0x241   :  { %v1059_v31 = vmul.f32 0.1, %v1053_v50 }
 0x242   :  { %v1062_v49 = vmax.f32 %v1027_v7, %v1058_v8 }
 0x243   :  { %v1015_v11 = vpop.f32.mrf.mxu1  ;;  %v1063_v32 = vmax.f32 %v1053_v50, %v1059_v31 }
 0x244   :  { %1221 = vst [vmem:[%s1835_s3 + $0x10] sm:$0xff] %v1062_v49  ;;  %v1041_v13 = vpop.f32.mrf.mxu3 }
 0x245   :  { %1222 = vst [vmem:[%s1835_s3 + $0x18] sm:$0xff] %v1063_v32 }

</bundles_post_ra>
